<compile_context>
chip_gen: v6e
topology: v6e:2x2x1
jax: 0.10.0
libtpu: 0.0.40
codegen_flags: <defaults>
</compile_context>

<pallas_src>
import functools

import jax
import jax.numpy as jnp
from jax import lax
from jax.experimental import pallas as pl
from jax.experimental.pallas import tpu as pltpu


def _round_up(x, m):
    return (x + m - 1) // m * m


# ----------------------------------------------------------------------------
# Fused Pallas kernel
# ----------------------------------------------------------------------------
def _make_fused_kernel(T, Bp, Hp, num_layers):
    """Kernel args: x_flat, (wih, whh, b) * L, w_lin, b_lin, out, pre_scr, seq_scr."""

    def kernel(*refs):
        x_ref = refs[0]
        idx = 1
        layers = []
        for _ in range(num_layers):
            layers.append((refs[idx], refs[idx + 1], refs[idx + 2]))
            idx += 3
        wlin_ref, blin_ref = refs[idx], refs[idx + 1]
        out_ref = refs[idx + 2]
        pre_scr = refs[idx + 3]   # (T*Bp, 4*Hp)  pre-gates of current layer
        seq_scr = refs[idx + 4]   # (T*Bp, Hp)    hidden sequence (layer -> layer)

        def run_layer(in_ref, wih_ref, whh_ref, b_ref):
            # Batched input projection over the whole sequence: one MXU matmul
            # with M = T*Bp rows instead of T matmuls with B rows.
            pre_scr[...] = (
                jnp.dot(in_ref[...], wih_ref[...],
                        preferred_element_type=jnp.float32)
                + b_ref[...]
            )

            def step(t, carry):
                h, c = carry
                off = pl.multiple_of(t * Bp, 8)
                gates = pre_scr[pl.ds(off, Bp), :] + jnp.dot(
                    h, whh_ref[...], preferred_element_type=jnp.float32
                )
                # Gate slices land on 128-lane boundaries (Hp % 128 == 0).
                i_g = jax.nn.sigmoid(gates[:, 0 * Hp:1 * Hp])
                f_g = jax.nn.sigmoid(gates[:, 1 * Hp:2 * Hp])
                g_g = jnp.tanh(gates[:, 2 * Hp:3 * Hp])
                o_g = jax.nn.sigmoid(gates[:, 3 * Hp:4 * Hp])
                c_new = f_g * c + i_g * g_g
                h_new = o_g * jnp.tanh(c_new)
                seq_scr[pl.ds(off, Bp), :] = h_new
                return h_new, c_new

            zeros = jnp.zeros((Bp, Hp), jnp.float32)
            lax.fori_loop(0, T, step, (zeros, zeros))

        # Layer 0 reads the (flattened) input; deeper layers read the
        # VMEM-resident hidden sequence of the previous layer.
        run_layer(x_ref, *layers[0])
        for l in range(1, num_layers):
            run_layer(seq_scr, *layers[l])

        # Final Linear fused as the epilogue (only HBM write of the kernel).
        h_last = seq_scr[pl.ds((T - 1) * Bp, Bp), :]
        out_ref[...] = (
            jnp.dot(h_last, wlin_ref[...], preferred_element_type=jnp.float32)
            + blin_ref[...]
        )

    return kernel


def _fused_forward(x_flat, layer_params, w_lin, b_lin, *, T, Bp, Hp,
                   num_layers, out_dim):
    kernel = _make_fused_kernel(T, Bp, Hp, num_layers)
    flat_inputs = [x_flat]
    for (wih, whh, b) in layer_params:
        flat_inputs += [wih, whh, b]
    flat_inputs += [w_lin, b_lin]

    vmem_spec = pl.BlockSpec(memory_space=pltpu.MemorySpace.VMEM)
    return pl.pallas_call(
        kernel,
        out_shape=jax.ShapeDtypeStruct((Bp, out_dim), jnp.float32),
        in_specs=[vmem_spec] * len(flat_inputs),
        out_specs=vmem_spec,
        scratch_shapes=[
            pltpu.VMEM((T * Bp, 4 * Hp), jnp.float32),  # pre-gates
            pltpu.VMEM((T * Bp, Hp), jnp.float32),      # hidden sequence
        ],
    )(*flat_inputs)


# ----------------------------------------------------------------------------
# Parameter packing (PyTorch layout -> padded, per-gate-blocked TPU layout)
# ----------------------------------------------------------------------------
def _pack_gate_weight(w, H, Hp, in_pad):
    """w: (4H, in_dim) PyTorch layout (gate order i,f,g,o) -> (in_pad, 4*Hp)."""
    in_dim = w.shape[1]
    w = w.reshape(4, H, in_dim)
    w = jnp.transpose(w, (2, 0, 1))                     # (in_dim, 4, H)
    w = jnp.pad(w, ((0, in_pad - in_dim), (0, 0), (0, Hp - H)))
    return w.reshape(in_pad, 4 * Hp)


def _pack_gate_bias(b, H, Hp):
    b = b.reshape(4, H)
    b = jnp.pad(b, ((0, 0), (0, Hp - H)))
    return b.reshape(1, 4 * Hp)


def pack_params(raw, hidden_size):
    """Pack raw PyTorch-shaped params into the padded kernel layout."""
    H = hidden_size
    Hp = _round_up(H, 128)
    packed = {"lstm": [], "linear": {}}
    for li, layer in enumerate(raw["lstm"]):
        in_dim = layer["w_ih"].shape[1]
        in_pad = in_dim if li == 0 else Hp
        packed["lstm"].append({
            "wih": _pack_gate_weight(layer["w_ih"], H, Hp, in_pad),
            "whh": _pack_gate_weight(layer["w_hh"], H, Hp, Hp),
            "b": _pack_gate_bias(layer["b_ih"] + layer["b_hh"], H, Hp),
        })
    w = raw["linear"]["w"]                              # (out_dim, H)
    packed["linear"] = {
        "w_t": jnp.pad(w.T, ((0, Hp - H), (0, 0))),     # (Hp, out_dim)
        "b": raw["linear"]["b"][None, :],               # (1, out_dim)
    }
    return packed


# ----------------------------------------------------------------------------
# Forward pass (equivalent to LSTMModel.forward in eval mode)
# ----------------------------------------------------------------------------
@functools.partial(jax.jit, static_argnames=("label_width", "num_outputs"))
def lstm_model_forward(x, params, *, label_width, num_outputs):
    """x: (B, T, num_inputs) batch_first -> (B, label_width, num_outputs)."""
    B, T, I = x.shape
    Bp = _round_up(B, 8)
    Hp = params["lstm"][0]["whh"].shape[0]
    num_layers = len(params["lstm"])
    out_dim = label_width * num_outputs

    # Time-major, batch padded to a sublane multiple, flattened to (T*Bp, I).
    seq = jnp.transpose(x.astype(jnp.float32), (1, 0, 2))
    seq = jnp.pad(seq, ((0, 0), (0, Bp - B), (0, 0)))
    x_flat = seq.reshape(T * Bp, I)

    layer_params = [(l["wih"], l["whh"], l["b"]) for l in params["lstm"]]
    y = _fused_forward(
        x_flat, layer_params, params["linear"]["w_t"], params["linear"]["b"],
        T=T, Bp=Bp, Hp=Hp, num_layers=num_layers, out_dim=out_dim)
    return y[:B].reshape(B, label_width, num_outputs)


# ----------------------------------------------------------------------------
# Deterministic raw parameters (PyTorch nn.LSTM / nn.Linear shapes)
# ----------------------------------------------------------------------------
def init_params(key, num_inputs, hidden_size, num_layers, label_width,
                num_outputs):
    raw = {"lstm": [], "linear": {}}
    k = 1.0 / jnp.sqrt(hidden_size)
    for layer in range(num_layers):
        in_dim = num_inputs if layer == 0 else hidden_size
        key, k1, k2, k3, k4 = jax.random.split(key, 5)
        raw["lstm"].append({
            "w_ih": jax.random.uniform(k1, (4 * hidden_size, in_dim),
                                       jnp.float32, -k, k),
            "w_hh": jax.random.uniform(k2, (4 * hidden_size, hidden_size),
                                       jnp.float32, -k, k),
            "b_ih": jax.random.uniform(k3, (4 * hidden_size,), jnp.float32,
                                       -k, k),
            "b_hh": jax.random.uniform(k4, (4 * hidden_size,), jnp.float32,
                                       -k, k),
        })
    out_dim = label_width * num_outputs
    key, k1, k2 = jax.random.split(key, 3)
    raw["linear"] = {
        "w": jax.random.uniform(k1, (out_dim, hidden_size), jnp.float32, -k, k),
        "b": jax.random.uniform(k2, (out_dim,), jnp.float32, -k, k),
    }
    return raw


def reference_forward(x, raw, label_width, num_outputs):
    """Pure-JAX reference matching PyTorch LSTM eval semantics."""
    B, T, _ = x.shape
    h_seq = x.astype(jnp.float32)
    for layer in raw["lstm"]:
        w_ih, w_hh = layer["w_ih"], layer["w_hh"]
        b = layer["b_ih"] + layer["b_hh"]
        H = w_hh.shape[1]
        h = jnp.zeros((B, H), jnp.float32)
        c = jnp.zeros((B, H), jnp.float32)
        outs = []
        for t in range(T):
            g = h_seq[:, t, :] @ w_ih.T + h @ w_hh.T + b
            i_g = jax.nn.sigmoid(g[:, 0 * H:1 * H])
            f_g = jax.nn.sigmoid(g[:, 1 * H:2 * H])
            g_g = jnp.tanh(g[:, 2 * H:3 * H])
            o_g = jax.nn.sigmoid(g[:, 3 * H:4 * H])
            c = f_g * c + i_g * g_g
            h = o_g * jnp.tanh(c)
            outs.append(h)
        h_seq = jnp.stack(outs, axis=1)
    y = h_seq[:, -1, :] @ raw["linear"]["w"].T + raw["linear"]["b"]
    return y.reshape(B, label_width, num_outputs)


if __name__ == "__main__":
    batch = 2
    input_width = 8        # sequence length T
    num_inputs = 4
    hidden_size = 32
    num_layers = 2
    label_width = 4
    num_outputs = 3

    key = jax.random.PRNGKey(0)
    key, pkey, xkey = jax.random.split(key, 3)
    raw_params = init_params(pkey, num_inputs, hidden_size, num_layers,
                             label_width, num_outputs)
    packed_params = pack_params(raw_params, hidden_size)
    x = jax.random.normal(xkey, (batch, input_width, num_inputs),
                          dtype=jnp.float32)

    out = lstm_model_forward(x, packed_params, label_width=label_width,
                             num_outputs=num_outputs)
    out = jax.block_until_ready(out)
    assert out.shape == (batch, label_width, num_outputs), out.shape

    ref = reference_forward(x, raw_params, label_width, num_outputs)
    err = float(jnp.max(jnp.abs(out - ref)))
    assert err < 2e-3, f"max abs err {err}"
    print("KERNEL_OK")
</pallas_src>

<mosaic_0001>
module attributes {stable_mosaic.version = 11 : i64} {
  func.func @kernel(%arg0: memref<64x4xf32, #tpu.memory_space<vmem>>, %arg1: memref<4x512xf32, #tpu.memory_space<vmem>>, %arg2: memref<128x512xf32, #tpu.memory_space<vmem>>, %arg3: memref<1x512xf32, #tpu.memory_space<vmem>>, %arg4: memref<128x512xf32, #tpu.memory_space<vmem>>, %arg5: memref<128x512xf32, #tpu.memory_space<vmem>>, %arg6: memref<1x512xf32, #tpu.memory_space<vmem>>, %arg7: memref<128x12xf32, #tpu.memory_space<vmem>>, %arg8: memref<1x12xf32, #tpu.memory_space<vmem>>, %arg9: memref<8x12xf32, #tpu.memory_space<vmem>>, %arg10: memref<64x512xf32, #tpu.memory_space<vmem>>, %arg11: memref<64x128xf32, #tpu.memory_space<vmem>>) attributes {dimension_semantics = [], scalar_prefetch = 0 : i64, scratch_operands = 2 : i64, tpu.core_type = #tpu.core_type<tc>} {
    %c0 = arith.constant 0 : index
    %c0_0 = arith.constant 0 : index
    %0 = vector.load %arg0[%c0, %c0_0] : memref<64x4xf32, #tpu.memory_space<vmem>>, vector<64x4xf32>
    %c0_1 = arith.constant 0 : index
    %c0_2 = arith.constant 0 : index
    %1 = vector.load %arg1[%c0_1, %c0_2] : memref<4x512xf32, #tpu.memory_space<vmem>>, vector<4x512xf32>
    %cst = arith.constant dense<0.000000e+00> : vector<64x512xf32>
    %2 = tpu.matmul %0, %1, %cst {dimension_numbers = #tpu.dot_dimension_numbers<[1], [0], [0], [1], [0, 0, 1, 1], [], []>} : vector<64x4xf32>, vector<4x512xf32>, vector<64x512xf32> -> vector<64x512xf32>
    %c0_3 = arith.constant 0 : index
    %c0_4 = arith.constant 0 : index
    %3 = vector.load %arg3[%c0_3, %c0_4] : memref<1x512xf32, #tpu.memory_space<vmem>>, vector<1x512xf32>
    %4 = vector.broadcast %3 : vector<1x512xf32> to vector<64x512xf32>
    %5 = arith.addf %2, %4 : vector<64x512xf32>
    %c0_5 = arith.constant 0 : index
    %c0_6 = arith.constant 0 : index
    %6 = vector.load %arg10[%c0_5, %c0_6] : memref<64x512xf32, #tpu.memory_space<vmem>>, vector<64x512xf32>
    tpu.vector_store %arg10[%c0_5, %c0_6], %5 {strides = array<i32>} : memref<64x512xf32, #tpu.memory_space<vmem>>, vector<64x512xf32>,
    %cst_7 = arith.constant 0.000000e+00 : f32
    %7 = vector.broadcast %cst_7 : f32 to vector<8x128xf32>
    %c0_i32 = arith.constant 0 : i32
    %c8_i32 = arith.constant 8 : i32
    %8 = arith.addi %c0_i32, %c8_i32 : i32
    %c1_i32 = arith.constant 1 : i32
    %9:2 = scf.for %arg12 = %c0_i32 to %8 step %c1_i32 iter_args(%arg13 = %7, %arg14 = %7) -> (vector<8x128xf32>, vector<8x128xf32>)  : i32 {
      %c8_i32_31 = arith.constant 8 : i32
      %27 = arith.muli %arg12, %c8_i32_31 : i32
      %28 = tpu.assume_multiple %27, 8 : i32
      %29 = arith.index_cast %28 : i32 to index
      %c0_32 = arith.constant 0 : index
      %30 = vector.load %arg10[%29, %c0_32] : memref<64x512xf32, #tpu.memory_space<vmem>>, vector<8x512xf32>
      %c0_33 = arith.constant 0 : index
      %c0_34 = arith.constant 0 : index
      %31 = vector.load %arg2[%c0_33, %c0_34] : memref<128x512xf32, #tpu.memory_space<vmem>>, vector<128x512xf32>
      %cst_35 = arith.constant dense<0.000000e+00> : vector<8x512xf32>
      %32 = tpu.matmul %arg13, %31, %cst_35 {dimension_numbers = #tpu.dot_dimension_numbers<[1], [0], [0], [1], [0, 0, 1, 1], [], []>} : vector<8x128xf32>, vector<128x512xf32>, vector<8x512xf32> -> vector<8x512xf32>
      %33 = arith.addf %30, %32 : vector<8x512xf32>
      %34 = vector.extract_strided_slice %33 {offsets = [0, 0], sizes = [8, 128], strides = [1, 1]} : vector<8x512xf32> to vector<8x128xf32>
      %35 = arith.negf %34 : vector<8x128xf32>
      %36 = math.exp %35 : vector<8x128xf32>
      %cst_36 = arith.constant 1.000000e+00 : f32
      %37 = vector.broadcast %cst_36 : f32 to vector<8x128xf32>
      %38 = arith.addf %37, %36 : vector<8x128xf32>
      %39 = arith.divf %37, %38 : vector<8x128xf32>
      %40 = vector.extract_strided_slice %33 {offsets = [0, 128], sizes = [8, 128], strides = [1, 1]} : vector<8x512xf32> to vector<8x128xf32>
      %41 = arith.negf %40 : vector<8x128xf32>
      %42 = math.exp %41 : vector<8x128xf32>
      %cst_37 = arith.constant 1.000000e+00 : f32
      %43 = vector.broadcast %cst_37 : f32 to vector<8x128xf32>
      %44 = arith.addf %43, %42 : vector<8x128xf32>
      %45 = arith.divf %43, %44 : vector<8x128xf32>
      %46 = vector.extract_strided_slice %33 {offsets = [0, 256], sizes = [8, 128], strides = [1, 1]} : vector<8x512xf32> to vector<8x128xf32>
      %47 = math.tanh %46 : vector<8x128xf32>
      %48 = vector.extract_strided_slice %33 {offsets = [0, 384], sizes = [8, 128], strides = [1, 1]} : vector<8x512xf32> to vector<8x128xf32>
      %49 = arith.negf %48 : vector<8x128xf32>
      %50 = math.exp %49 : vector<8x128xf32>
      %cst_38 = arith.constant 1.000000e+00 : f32
      %51 = vector.broadcast %cst_38 : f32 to vector<8x128xf32>
      %52 = arith.addf %51, %50 : vector<8x128xf32>
      %53 = arith.divf %51, %52 : vector<8x128xf32>
      %54 = arith.mulf %45, %arg14 : vector<8x128xf32>
      %55 = arith.mulf %39, %47 : vector<8x128xf32>
      %56 = arith.addf %54, %55 : vector<8x128xf32>
      %57 = math.tanh %56 : vector<8x128xf32>
      %58 = arith.mulf %53, %57 : vector<8x128xf32>
      %59 = arith.index_cast %28 : i32 to index
      %c0_39 = arith.constant 0 : index
      %60 = vector.load %arg11[%59, %c0_39] : memref<64x128xf32, #tpu.memory_space<vmem>>, vector<8x128xf32>
      tpu.vector_store %arg11[%59, %c0_39], %58 {strides = array<i32>} : memref<64x128xf32, #tpu.memory_space<vmem>>, vector<8x128xf32>,
      scf.yield %58, %56 : vector<8x128xf32>, vector<8x128xf32>
    }
    %c8_i32_8 = arith.constant 8 : i32
    %c0_9 = arith.constant 0 : index
    %c0_10 = arith.constant 0 : index
    %10 = vector.load %arg11[%c0_9, %c0_10] : memref<64x128xf32, #tpu.memory_space<vmem>>, vector<64x128xf32>
    %c0_11 = arith.constant 0 : index
    %c0_12 = arith.constant 0 : index
    %11 = vector.load %arg4[%c0_11, %c0_12] : memref<128x512xf32, #tpu.memory_space<vmem>>, vector<128x512xf32>
    %cst_13 = arith.constant dense<0.000000e+00> : vector<64x512xf32>
    %12 = tpu.matmul %10, %11, %cst_13 {dimension_numbers = #tpu.dot_dimension_numbers<[1], [0], [0], [1], [0, 0, 1, 1], [], []>} : vector<64x128xf32>, vector<128x512xf32>, vector<64x512xf32> -> vector<64x512xf32>
    %c0_14 = arith.constant 0 : index
    %c0_15 = arith.constant 0 : index
    %13 = vector.load %arg6[%c0_14, %c0_15] : memref<1x512xf32, #tpu.memory_space<vmem>>, vector<1x512xf32>
    %14 = vector.broadcast %13 : vector<1x512xf32> to vector<64x512xf32>
    %15 = arith.addf %12, %14 : vector<64x512xf32>
    %c0_16 = arith.constant 0 : index
    %c0_17 = arith.constant 0 : index
    %16 = vector.load %arg10[%c0_16, %c0_17] : memref<64x512xf32, #tpu.memory_space<vmem>>, vector<64x512xf32>
    tpu.vector_store %arg10[%c0_16, %c0_17], %15 {strides = array<i32>} : memref<64x512xf32, #tpu.memory_space<vmem>>, vector<64x512xf32>,
    %cst_18 = arith.constant 0.000000e+00 : f32
    %17 = vector.broadcast %cst_18 : f32 to vector<8x128xf32>
    %c0_i32_19 = arith.constant 0 : i32
    %c8_i32_20 = arith.constant 8 : i32
    %18 = arith.addi %c0_i32_19, %c8_i32_20 : i32
    %c1_i32_21 = arith.constant 1 : i32
    %19:2 = scf.for %arg12 = %c0_i32_19 to %18 step %c1_i32_21 iter_args(%arg13 = %17, %arg14 = %17) -> (vector<8x128xf32>, vector<8x128xf32>)  : i32 {
      %c8_i32_31 = arith.constant 8 : i32
      %27 = arith.muli %arg12, %c8_i32_31 : i32
      %28 = tpu.assume_multiple %27, 8 : i32
      %29 = arith.index_cast %28 : i32 to index
      %c0_32 = arith.constant 0 : index
      %30 = vector.load %arg10[%29, %c0_32] : memref<64x512xf32, #tpu.memory_space<vmem>>, vector<8x512xf32>
      %c0_33 = arith.constant 0 : index
      %c0_34 = arith.constant 0 : index
      %31 = vector.load %arg5[%c0_33, %c0_34] : memref<128x512xf32, #tpu.memory_space<vmem>>, vector<128x512xf32>
      %cst_35 = arith.constant dense<0.000000e+00> : vector<8x512xf32>
      %32 = tpu.matmul %arg13, %31, %cst_35 {dimension_numbers = #tpu.dot_dimension_numbers<[1], [0], [0], [1], [0, 0, 1, 1], [], []>} : vector<8x128xf32>, vector<128x512xf32>, vector<8x512xf32> -> vector<8x512xf32>
      %33 = arith.addf %30, %32 : vector<8x512xf32>
      %34 = vector.extract_strided_slice %33 {offsets = [0, 0], sizes = [8, 128], strides = [1, 1]} : vector<8x512xf32> to vector<8x128xf32>
      %35 = arith.negf %34 : vector<8x128xf32>
      %36 = math.exp %35 : vector<8x128xf32>
      %cst_36 = arith.constant 1.000000e+00 : f32
      %37 = vector.broadcast %cst_36 : f32 to vector<8x128xf32>
      %38 = arith.addf %37, %36 : vector<8x128xf32>
      %39 = arith.divf %37, %38 : vector<8x128xf32>
      %40 = vector.extract_strided_slice %33 {offsets = [0, 128], sizes = [8, 128], strides = [1, 1]} : vector<8x512xf32> to vector<8x128xf32>
      %41 = arith.negf %40 : vector<8x128xf32>
      %42 = math.exp %41 : vector<8x128xf32>
      %cst_37 = arith.constant 1.000000e+00 : f32
      %43 = vector.broadcast %cst_37 : f32 to vector<8x128xf32>
      %44 = arith.addf %43, %42 : vector<8x128xf32>
      %45 = arith.divf %43, %44 : vector<8x128xf32>
      %46 = vector.extract_strided_slice %33 {offsets = [0, 256], sizes = [8, 128], strides = [1, 1]} : vector<8x512xf32> to vector<8x128xf32>
      %47 = math.tanh %46 : vector<8x128xf32>
      %48 = vector.extract_strided_slice %33 {offsets = [0, 384], sizes = [8, 128], strides = [1, 1]} : vector<8x512xf32> to vector<8x128xf32>
      %49 = arith.negf %48 : vector<8x128xf32>
      %50 = math.exp %49 : vector<8x128xf32>
      %cst_38 = arith.constant 1.000000e+00 : f32
      %51 = vector.broadcast %cst_38 : f32 to vector<8x128xf32>
      %52 = arith.addf %51, %50 : vector<8x128xf32>
      %53 = arith.divf %51, %52 : vector<8x128xf32>
      %54 = arith.mulf %45, %arg14 : vector<8x128xf32>
      %55 = arith.mulf %39, %47 : vector<8x128xf32>
      %56 = arith.addf %54, %55 : vector<8x128xf32>
      %57 = math.tanh %56 : vector<8x128xf32>
      %58 = arith.mulf %53, %57 : vector<8x128xf32>
      %59 = arith.index_cast %28 : i32 to index
      %c0_39 = arith.constant 0 : index
      %60 = vector.load %arg11[%59, %c0_39] : memref<64x128xf32, #tpu.memory_space<vmem>>, vector<8x128xf32>
      tpu.vector_store %arg11[%59, %c0_39], %58 {strides = array<i32>} : memref<64x128xf32, #tpu.memory_space<vmem>>, vector<8x128xf32>,
      scf.yield %58, %56 : vector<8x128xf32>, vector<8x128xf32>
    }
    %c8_i32_22 = arith.constant 8 : i32
    %c56 = arith.constant 56 : index
    %c0_23 = arith.constant 0 : index
    %20 = vector.load %arg11[%c56, %c0_23] : memref<64x128xf32, #tpu.memory_space<vmem>>, vector<8x128xf32>
    %c0_24 = arith.constant 0 : index
    %c0_25 = arith.constant 0 : index
    %21 = vector.load %arg7[%c0_24, %c0_25] : memref<128x12xf32, #tpu.memory_space<vmem>>, vector<128x12xf32>
    %cst_26 = arith.constant dense<0.000000e+00> : vector<8x12xf32>
    %22 = tpu.matmul %20, %21, %cst_26 {dimension_numbers = #tpu.dot_dimension_numbers<[1], [0], [0], [1], [0, 0, 1, 1], [], []>} : vector<8x128xf32>, vector<128x12xf32>, vector<8x12xf32> -> vector<8x12xf32>
    %c0_27 = arith.constant 0 : index
    %c0_28 = arith.constant 0 : index
    %23 = vector.load %arg8[%c0_27, %c0_28] : memref<1x12xf32, #tpu.memory_space<vmem>>, vector<1x12xf32>
    %24 = vector.broadcast %23 : vector<1x12xf32> to vector<8x12xf32>
    %25 = arith.addf %22, %24 : vector<8x12xf32>
    %c0_29 = arith.constant 0 : index
    %c0_30 = arith.constant 0 : index
    %26 = vector.load %arg9[%c0_29, %c0_30] : memref<8x12xf32, #tpu.memory_space<vmem>>, vector<8x12xf32>
    tpu.vector_store %arg9[%c0_29, %c0_30], %25 {strides = array<i32>} : memref<8x12xf32, #tpu.memory_space<vmem>>, vector<8x12xf32>,
    return
  }
}

</mosaic_0001>

<bundles_post_ra>
// kernel: lstm_model_forward.1
= control target key start
LH: loop header
LB: loop body
LE: loop exit
PB: predicated region body
PF: predicated region fallthrough
CT: control target
= control target key end

     0   :  { %14 = vsyncpa [#allocation5], 0  ;;  %s2068_s0 = inlined_call_operand.vmem [shape: f32[64,4], index: 0, kind: input, shape index: {}]   ;;  %s2069_s1 = inlined_call_operand.vmem [shape: f32[4,512], index: 1, kind: input, shape index: {}]   ;;  %s2070_s2 = inlined_call_operand.hbm [shape: f32[128,512], index: 2, kind: input, shape index: {}]   ;;  %s2071_s3 = inlined_call_operand.vmem [shape: f32[1,512], index: 3, kind: input, shape index: {}]   ;;  %s2072_s4 = inlined_call_operand.hbm [shape: f32[128,512], index: 4, kind: input, shape index: {}]   ;;  %s2073_s5 = inlined_call_operand.hbm [shape: f32[128,512], index: 5, kind: input, shape index: {}]   ;;  %s2074_s6 = inlined_call_operand.vmem [shape: f32[1,512], index: 6, kind: input, shape index: {}]   ;;  %s2075_s7 = inlined_call_operand.vmem [shape: f32[128,12], index: 7, kind: input, shape index: {}]   ;;  %s2076_s8 = inlined_call_operand.vmem [shape: f32[1,12], index: 8, kind: input, shape index: {}]   ;;  %s2077_s9 = inlined_call_operand.vmem [shape: f32[8,12], index: 9, kind: output, shape index: {}]  }
   0x1   :  { %15 = vsyncpa [#allocation7], 0  ;;  %s1683_s30 = smov [#allocation6]   ;;  %s1684_s11 = smov [#allocation4]  }
   0x2   :  { %s39_s10 = sshll.u32 %s1683_s30, 4  ;;  %s25_s12 = sshll.u32 %s1684_s11, 4  ;;  %s40_s10 = int_to_ptr.vmem [resolvable:$true] %s39_s10  ;;  %s26_s12 = int_to_ptr.vmem [resolvable:$true] %s25_s12 }
   0x3   :  { %s1579_s13 = scalar_lea.vmem %s40_s10, 8192  ;;  %p1584_p1 = scmp.lt.s32.totalorder %s40_s10, %s40_s10 }
   0x4   :  { %p1580_p0 = scmp.ne.s32.totalorder %s40_s10, %s1579_s13  ;;  %p1585_p2 = scmp.lt.s32.totalorder %s1579_s13, %s1579_s13 }
   0x6   :  { %p1586_p3 = por %p1585_p2, %p1584_p1 }
   0x8   :  { %p1587_p4 = pnand %p1586_p3, %p1580_p0 }
   0xa   :  { %1590 = shalt.err (!%p1587_p4)
}
   0xb   :  { %s1685_s14 = smov 512   ;;  %s1686_s15 = smov 32  }
   0xc   :  { %45 = dma.hbm_to_vmem [thread:$0]  %s2072_s4, 8192, %s40_s10, [#allocation7], %s1685_s14, %s1685_s14, %s1686_s15  }
   0xd   :  { %s1599_s18 = scalar_lea.vmem %s26_s12, 8192  ;;  %p1604_p6 = scmp.lt.s32.totalorder %s26_s12, %s26_s12 }
   0xe   :  { %p1600_p5 = scmp.ne.s32.totalorder %s26_s12, %s1599_s18  ;;  %p1605_p7 = scmp.lt.s32.totalorder %s1599_s18, %s1599_s18 }
  0x10   :  { %p1606_p8 = por %p1605_p7, %p1604_p6 }
  0x12   :  { %p1607_p9 = pnand %p1606_p8, %p1600_p5 }
  0x14   :  { %1610 = shalt.err (!%p1607_p9)
}
  0x15   :  { %31 = dma.hbm_to_vmem [thread:$0]  %s2070_s2, 8192, %s26_s12, [#allocation5], %s1685_s14, %s1685_s14, %s1686_s15  }
  0x16   :  { %s1687_s21 = smov [#allocation8]  }
  0x17   :  { %s51_s22 = sshll.u32 %s1687_s21, 4  ;;  %s52_s22 = int_to_ptr.vmem [resolvable:$true] %s51_s22 }
  0x18   :  { %s1619_s23 = scalar_lea.vmem %s52_s22, 8192  ;;  %p1624_p11 = scmp.lt.s32.totalorder %s52_s22, %s52_s22 }
  0x19   :  { %p1620_p10 = scmp.ne.s32.totalorder %s52_s22, %s1619_s23  ;;  %p1625_p12 = scmp.lt.s32.totalorder %s1619_s23, %s1619_s23 }
  0x1b   :  { %p1626_p13 = por %p1625_p12, %p1624_p11 }
  0x1d   :  { %p1627_p0 = pnand %p1626_p13, %p1620_p10 }
  0x1f   :  { %1630 = shalt.err (!%p1627_p0)
}
  0x20   :  { %57 = dma.hbm_to_vmem [thread:$0]  %s2073_s5, 8192, %s52_s22, [#allocation7], %s1685_s14, %s1685_s14, %s1686_s15  }
  0x21   :  { %1655 = dma.done.wait [#allocation5], 8192  }
  0x22   :  { %1656 = vsyncadd [#allocation5], 4294959104 }
  0x23   :  { %1657 = dma.done.wait [#allocation7], 16384  }
  0x24   :  { %1658 = vsyncadd [#allocation7], 4294950912  ;;  %v1688_v0 = vmov 0.0   ;;  %v81_v1 = vld [vmem:[%s2069_s1] sm:$0xff]  ;;  %vm134_vm0 = vcmask 1043456   ;;  %v82_v2 = vld [vmem:[%s2069_s1 + $0x8] sm:$0xff]  ;;  %v85_v13 = vlaneseq }
  0x25   :  { %207 = vmatprep.mubr.f32.mxu0 %v1688_v0  ;;  %320 = vmatprep.mubr.f32.mxu1 %v1688_v0  ;;  %v107_v3 = vcombine.high %v81_v1, %v81_v1  ;;  %v108_v4 = vcombine.high %v82_v2, %v82_v2  ;;  %v73_v5 = vld [vmem:[%s2068_s0] sm:$0xff]  ;;  %vm109_vm1 = vcmask 31744   ;;  %v74_v6 = vld [vmem:[%s2068_s0 + $0x8] sm:$0xff]  ;;  %v75_v7 = vld [vmem:[%s2068_s0 + $0x10] sm:$0xff] }
  0x26   :  { %v76_v8 = vld [vmem:[%s2068_s0 + $0x18] sm:$0xff]  ;;  %v77_v9 = vld [vmem:[%s2068_s0 + $0x20] sm:$0xff]  ;;  %v78_v10 = vld [vmem:[%s2068_s0 + $0x28] sm:$0xff]  ;;  %v1813_v14 = vshrl.u32 %v85_v13, 7 }
  0x27   :  { %1393 = vmatprep.subr.msk.mxu0 %vm134_vm0, %v107_v3  ;;  %1403 = vmatprep.subr.msk.mxu1 %vm134_vm0, %v108_v4  ;;  %v79_v11 = vld [vmem:[%s2068_s0 + $0x30] sm:$0xff]  ;;  %v80_v12 = vld [vmem:[%s2068_s0 + $0x38] sm:$0xff]  ;;  %v83_v17 = vld [vmem:[%s2071_s3] sm:$0xf]  ;;  %s1874_s0 = smov 0  }
  0x28   :  { %1394 = vmatpush1.msk.msra.mxu0 %vm134_vm0, %v81_v1  ;;  %1404 = vmatpush1.msk.msra.mxu1 %vm134_vm0, %v82_v2  ;;  %v87_v15 = vsub.s32 0, %v1813_v14  ;;  %v95_v16 = vsub.s32 2, %v1813_v14  ;;  %v91_v18 = vsub.s32 1, %v1813_v14  ;;  %v99_v19 = vsub.s32 3, %v1813_v14 }
  0x29   :  { %1395 = vmatmul.mubr.msk.f32.vlgmr.msra.gmra.mxu0 %vm109_vm1, %v73_v5  ;;  %1405 = vmatmul.mubr.msk.f32.vlgmr.msra.gmra.mxu1 %vm109_vm1, %v73_v5 }
  0x2a   :  { %213 = vmatprep.mubr.f32.mxu0 %v1688_v0  ;;  %326 = vmatprep.mubr.f32.mxu1 %v1688_v0  ;;  %v1824_v20 = vrot.slane %v83_v17, %v87_v15  ;;  %v1828_v21 = vrot.slane %v83_v17, %v95_v16  ;;  %v1832_v22 = vrot.slane %v83_v17, %v91_v18 }
  0x2b   :  { %v1836_v23 = vrot.slane %v83_v17, %v99_v19 }
  0x2d   :  { %1396 = vmatmul.mubr.msk.f32.gmra.mxu0 %vm109_vm1, %v74_v6  ;;  %1406 = vmatmul.mubr.msk.f32.gmra.mxu1 %vm109_vm1, %v74_v6 }
  0x2e   :  { %219 = vmatprep.mubr.f32.mxu0 %v1688_v0  ;;  %332 = vmatprep.mubr.f32.mxu1 %v1688_v0 }
  0x31   :  { %1397 = vmatmul.mubr.msk.f32.gmra.mxu0 %vm109_vm1, %v75_v7  ;;  %1407 = vmatmul.mubr.msk.f32.gmra.mxu1 %vm109_vm1, %v75_v7 }
  0x32   :  { %225 = vmatprep.mubr.f32.mxu0 %v1688_v0  ;;  %338 = vmatprep.mubr.f32.mxu1 %v1688_v0 }
  0x35   :  { %1398 = vmatmul.mubr.msk.f32.gmra.mxu0 %vm109_vm1, %v76_v8  ;;  %1408 = vmatmul.mubr.msk.f32.gmra.mxu1 %vm109_vm1, %v76_v8 }
  0x36   :  { %231 = vmatprep.mubr.f32.mxu0 %v1688_v0  ;;  %344 = vmatprep.mubr.f32.mxu1 %v1688_v0 }
  0x39   :  { %1399 = vmatmul.mubr.msk.f32.gmra.mxu0 %vm109_vm1, %v77_v9  ;;  %1409 = vmatmul.mubr.msk.f32.gmra.mxu1 %vm109_vm1, %v77_v9 }
  0x3a   :  { %237 = vmatprep.mubr.f32.mxu0 %v1688_v0  ;;  %350 = vmatprep.mubr.f32.mxu1 %v1688_v0 }
  0x3d   :  { %1400 = vmatmul.mubr.msk.f32.gmra.mxu0 %vm109_vm1, %v78_v10  ;;  %1410 = vmatmul.mubr.msk.f32.gmra.mxu1 %vm109_vm1, %v78_v10 }
  0x3e   :  { %243 = vmatprep.mubr.f32.mxu0 %v1688_v0  ;;  %356 = vmatprep.mubr.f32.mxu1 %v1688_v0 }
  0x41   :  { %1401 = vmatmul.mubr.msk.f32.gmra.mxu0 %vm109_vm1, %v79_v11  ;;  %1411 = vmatmul.mubr.msk.f32.gmra.mxu1 %vm109_vm1, %v79_v11 }
  0x42   :  { %249 = vmatprep.mubr.f32.mxu0 %v1688_v0  ;;  %362 = vmatprep.mubr.f32.mxu1 %v1688_v0 }
  0x45   :  { %1402 = vmatmul.mubr.msk.f32.gmra.mxu0 %vm109_vm1, %v80_v12  ;;  %1412 = vmatmul.mubr.msk.f32.gmra.mxu1 %vm109_vm1, %v80_v12 }
  0xe9   :  { %v209_v24 = vpop.f32.mrf.mxu0  ;;  %v322_v25 = vpop.f32.mrf.mxu1 }
  0xea   :  { %v210_v26 = vadd.f32 %v209_v24, %v1824_v20  ;;  %v323_v27 = vadd.f32 %v322_v25, %v1828_v21 }
  0xeb   :  { %v211_v28 = vpop.f32.mrf.mxu0  ;;  %v324_v29 = vpop.f32.mrf.mxu1 }
  0xec   :  { %369 = vst [vmem:[#allocation2] sm:$0xff] %v210_v26  ;;  %371 = vst [vmem:[#allocation2 + $0x10] sm:$0xff] %v323_v27  ;;  %v212_v30 = vadd.f32 %v211_v28, %v1832_v22  ;;  %v325_v31 = vadd.f32 %v324_v29, %v1836_v23 }
  0xed   :  { %v215_v32 = vpop.f32.mrf.mxu0  ;;  %v328_v33 = vpop.f32.mrf.mxu1 }
  0xee   :  { %370 = vst [vmem:[#allocation2 + $0x8] sm:$0xff] %v212_v30  ;;  %372 = vst [vmem:[#allocation2 + $0x18] sm:$0xff] %v325_v31  ;;  %v216_v34 = vadd.f32 %v215_v32, %v1824_v20  ;;  %v329_v35 = vadd.f32 %v328_v33, %v1828_v21 }
  0xef   :  { %v217_v36 = vpop.f32.mrf.mxu0  ;;  %v330_v37 = vpop.f32.mrf.mxu1 }
  0xf0   :  { %373 = vst [vmem:[#allocation2 + $0x20] sm:$0xff] %v216_v34  ;;  %375 = vst [vmem:[#allocation2 + $0x30] sm:$0xff] %v329_v35  ;;  %v218_v38 = vadd.f32 %v217_v36, %v1832_v22  ;;  %v331_v39 = vadd.f32 %v330_v37, %v1836_v23  ;;  %v1870_v34 = vmov 0.0   ;;  %v1872_v35 = vmov 0.0  }
  0xf1   :  { %v221_v40 = vpop.f32.mrf.mxu0  ;;  %v334_v41 = vpop.f32.mrf.mxu1 }
  0xf2   :  { %374 = vst [vmem:[#allocation2 + $0x28] sm:$0xff] %v218_v38  ;;  %376 = vst [vmem:[#allocation2 + $0x38] sm:$0xff] %v331_v39  ;;  %v222_v42 = vadd.f32 %v221_v40, %v1824_v20  ;;  %v335_v43 = vadd.f32 %v334_v41, %v1828_v21 }
  0xf3   :  { %v223_v44 = vpop.f32.mrf.mxu0  ;;  %v336_v45 = vpop.f32.mrf.mxu1 }
  0xf4   :  { %377 = vst [vmem:[#allocation2 + $0x40] sm:$0xff] %v222_v42  ;;  %379 = vst [vmem:[#allocation2 + $0x50] sm:$0xff] %v335_v43  ;;  %v224_v46 = vadd.f32 %v223_v44, %v1832_v22  ;;  %v337_v47 = vadd.f32 %v336_v45, %v1836_v23 }
  0xf5   :  { %v227_v48 = vpop.f32.mrf.mxu0  ;;  %v340_v49 = vpop.f32.mrf.mxu1 }
  0xf6   :  { %378 = vst [vmem:[#allocation2 + $0x48] sm:$0xff] %v224_v46  ;;  %380 = vst [vmem:[#allocation2 + $0x58] sm:$0xff] %v337_v47  ;;  %v228_v50 = vadd.f32 %v227_v48, %v1824_v20  ;;  %v341_v51 = vadd.f32 %v340_v49, %v1828_v21 }
  0xf7   :  { %v229_v52 = vpop.f32.mrf.mxu0  ;;  %v342_v53 = vpop.f32.mrf.mxu1 }
  0xf8   :  { %381 = vst [vmem:[#allocation2 + $0x60] sm:$0xff] %v228_v50  ;;  %383 = vst [vmem:[#allocation2 + $0x70] sm:$0xff] %v341_v51  ;;  %v230_v54 = vadd.f32 %v229_v52, %v1832_v22  ;;  %v343_v55 = vadd.f32 %v342_v53, %v1836_v23 }
  0xf9   :  { %v233_v56 = vpop.f32.mrf.mxu0  ;;  %v346_v57 = vpop.f32.mrf.mxu1 }
  0xfa   :  { %382 = vst [vmem:[#allocation2 + $0x68] sm:$0xff] %v230_v54  ;;  %384 = vst [vmem:[#allocation2 + $0x78] sm:$0xff] %v343_v55  ;;  %v234_v58 = vadd.f32 %v233_v56, %v1824_v20  ;;  %v347_v59 = vadd.f32 %v346_v57, %v1828_v21 }
  0xfb   :  { %v235_v60 = vpop.f32.mrf.mxu0  ;;  %v348_v61 = vpop.f32.mrf.mxu1 }
  0xfc   :  { %385 = vst [vmem:[#allocation2 + $0x80] sm:$0xff] %v234_v58  ;;  %387 = vst [vmem:[#allocation2 + $0x90] sm:$0xff] %v347_v59  ;;  %v236_v62 = vadd.f32 %v235_v60, %v1832_v22  ;;  %v349_v63 = vadd.f32 %v348_v61, %v1836_v23 }
  0xfd   :  { %v239_v1 = vpop.f32.mrf.mxu0  ;;  %v352_v2 = vpop.f32.mrf.mxu1 }
  0xfe   :  { %386 = vst [vmem:[#allocation2 + $0x88] sm:$0xff] %v236_v62  ;;  %388 = vst [vmem:[#allocation2 + $0x98] sm:$0xff] %v349_v63  ;;  %v240_v3 = vadd.f32 %v239_v1, %v1824_v20  ;;  %v353_v4 = vadd.f32 %v352_v2, %v1828_v21 }
  0xff   :  { %v241_v5 = vpop.f32.mrf.mxu0  ;;  %v354_v6 = vpop.f32.mrf.mxu1 }
 0x100   :  { %389 = vst [vmem:[#allocation2 + $0xa0] sm:$0xff] %v240_v3  ;;  %391 = vst [vmem:[#allocation2 + $0xb0] sm:$0xff] %v353_v4  ;;  %v242_v7 = vadd.f32 %v241_v5, %v1832_v22  ;;  %v355_v8 = vadd.f32 %v354_v6, %v1836_v23 }
 0x101   :  { %v245_v9 = vpop.f32.mrf.mxu0  ;;  %v358_v10 = vpop.f32.mrf.mxu1 }
 0x102   :  { %390 = vst [vmem:[#allocation2 + $0xa8] sm:$0xff] %v242_v7  ;;  %392 = vst [vmem:[#allocation2 + $0xb8] sm:$0xff] %v355_v8  ;;  %v246_v11 = vadd.f32 %v245_v9, %v1824_v20  ;;  %v359_v12 = vadd.f32 %v358_v10, %v1828_v21 }
 0x103   :  { %v247_v13 = vpop.f32.mrf.mxu0  ;;  %v360_v17 = vpop.f32.mrf.mxu1 }
 0x104   :  { %393 = vst [vmem:[#allocation2 + $0xc0] sm:$0xff] %v246_v11  ;;  %395 = vst [vmem:[#allocation2 + $0xd0] sm:$0xff] %v359_v12  ;;  %v248_v24 = vadd.f32 %v247_v13, %v1832_v22  ;;  %v361_v25 = vadd.f32 %v360_v17, %v1836_v23 }
 0x105   :  { %v251_v26 = vpop.f32.mrf.mxu0  ;;  %v364_v27 = vpop.f32.mrf.mxu1 }
 0x106   :  { %394 = vst [vmem:[#allocation2 + $0xc8] sm:$0xff] %v248_v24  ;;  %396 = vst [vmem:[#allocation2 + $0xd8] sm:$0xff] %v361_v25  ;;  %v252_v28 = vadd.f32 %v251_v26, %v1824_v20  ;;  %v365_v29 = vadd.f32 %v364_v27, %v1828_v21 }
 0x107   :  { %v253_v30 = vpop.f32.mrf.mxu0  ;;  %v366_v31 = vpop.f32.mrf.mxu1 }
 0x108   :  { %397 = vst [vmem:[#allocation2 + $0xe0] sm:$0xff] %v252_v28  ;;  %399 = vst [vmem:[#allocation2 + $0xf0] sm:$0xff] %v365_v29  ;;  %v254_v32 = vadd.f32 %v253_v30, %v1832_v22  ;;  %v367_v33 = vadd.f32 %v366_v31, %v1836_v23 }
 0x10a   :  { %398 = vst [vmem:[#allocation2 + $0xe8] sm:$0xff] %v254_v32  ;;  %400 = vst [vmem:[#allocation2 + $0xf8] sm:$0xff] %v367_v33 }
 0x10b LB: > { %v480_v20 = vld [vmem:[#allocation4 + $0x1e8] sm:$0xff]  ;;  %v479_v21 = vld [vmem:[#allocation4 + $0x1e0] sm:$0xff]  ;;  %v1689_v36 = vmov 0.0   ;;  %v482_v41 = vld [vmem:[#allocation4 + $0x1f8] sm:$0xff]  ;;  %s1413_s3 = sshll.u32 %s1669_s0, 3  ;;  %s406_s0 = sadd.s32 1, %s1669_s0   ;;  %s1669_s0 = sphi %s1874_s0, %s406_s0   ;;  %v1665_v35 = vphi %v1872_v35, %v652_v35   ;;  %v1661_v34 = vphi %v1870_v34, %v650_v34  }
 0x10c   : > { %v476_v22 = vld [vmem:[#allocation4 + $0x1c8] sm:$0xff]  ;;  %483 = vmatprep.subr.mxu0 %v480_v20  ;;  %v475_v23 = vld [vmem:[#allocation4 + $0x1c0] sm:$0xff]  ;;  %547 = vmatprep.mubr.f32.mxu0 %v1689_v36  ;;  %v481_v43 = vld [vmem:[#allocation4 + $0x1f0] sm:$0xff]  ;;  %s410_s23 = sshra.s32 %s1413_s3, 3  ;;  %s653_s2 = scalar_lea.vmem [#allocation3], %s1413_s3 }
 0x10d   : > { %484 = vmatpush1.msra.mxu0 %v479_v21  ;;  %v472_v37 = vld [vmem:[#allocation4 + $0x1a8] sm:$0xff]  ;;  %618 = vmatprep.mubr.f32.mxu1 %v1689_v36  ;;  %v471_v38 = vld [vmem:[#allocation4 + $0x1a0] sm:$0xff]  ;;  %v478_v45 = vld [vmem:[#allocation4 + $0x1d8] sm:$0xff]  ;;  %s1426_s4 = sshll.u32 %s410_s23, 5  ;;  %p403_p1 = scmp.ge.s32.totalorder %s406_s0, 8  }
 0x10e   : > { %485 = vmatprep.subr.mxu0 %v476_v22  ;;  %v468_v39 = vld [vmem:[#allocation4 + $0x188] sm:$0xff]  ;;  %v467_v40 = vld [vmem:[#allocation4 + $0x180] sm:$0xff]  ;;  %554 = vmatprep.subr.mxu1 %v482_v41  ;;  %v477_v46 = vld [vmem:[#allocation4 + $0x1d0] sm:$0xff]  ;;  %s414_s24 = scalar_lea.vmem [#allocation2], %s1426_s4 }
 0x10f   : > { %486 = vmatpush1.msra.mxu0 %v475_v23  ;;  %v464_v42 = vld [vmem:[#allocation4 + $0x168] sm:$0xff]  ;;  %v463_v44 = vld [vmem:[#allocation4 + $0x160] sm:$0xff]  ;;  %555 = vmatpush1.msra.mxu1 %v481_v43  ;;  %v474_v48 = vld [vmem:[#allocation4 + $0x1b8] sm:$0xff] }
 0x110   : > { %487 = vmatprep.subr.mxu0 %v472_v37  ;;  %v460_v47 = vld [vmem:[#allocation4 + $0x148] sm:$0xff]  ;;  %556 = vmatprep.subr.mxu1 %v478_v45  ;;  %v459_v49 = vld [vmem:[#allocation4 + $0x140] sm:$0xff]  ;;  %v473_v50 = vld [vmem:[#allocation4 + $0x1b0] sm:$0xff] }
 0x111   : > { %488 = vmatpush1.msra.mxu0 %v471_v38  ;;  %557 = vmatpush1.msra.mxu1 %v477_v46  ;;  %v470_v51 = vld [vmem:[#allocation4 + $0x198] sm:$0xff]  ;;  %v456_v52 = vld [vmem:[#allocation4 + $0x128] sm:$0xff]  ;;  %v469_v53 = vld [vmem:[#allocation4 + $0x190] sm:$0xff] }
 0x112   : > { %489 = vmatprep.subr.mxu0 %v468_v39  ;;  %558 = vmatprep.subr.mxu1 %v474_v48  ;;  %v455_v54 = vld [vmem:[#allocation4 + $0x120] sm:$0xff]  ;;  %v466_v55 = vld [vmem:[#allocation4 + $0x178] sm:$0xff]  ;;  %v452_v56 = vld [vmem:[#allocation4 + $0x108] sm:$0xff] }
 0x113   : > { %490 = vmatpush1.msra.mxu0 %v467_v40  ;;  %559 = vmatpush1.msra.mxu1 %v473_v50  ;;  %v465_v57 = vld [vmem:[#allocation4 + $0x170] sm:$0xff]  ;;  %v451_v58 = vld [vmem:[#allocation4 + $0x100] sm:$0xff]  ;;  %v462_v59 = vld [vmem:[#allocation4 + $0x158] sm:$0xff] }
 0x114   : > { %491 = vmatprep.subr.mxu0 %v464_v42  ;;  %560 = vmatprep.subr.mxu1 %v470_v51  ;;  %v448_v60 = vld [vmem:[#allocation4 + $0xe8] sm:$0xff]  ;;  %v461_v61 = vld [vmem:[#allocation4 + $0x150] sm:$0xff]  ;;  %v447_v62 = vld [vmem:[#allocation4 + $0xe0] sm:$0xff] }
 0x115   : > { %492 = vmatpush1.msra.mxu0 %v463_v44  ;;  %561 = vmatpush1.msra.mxu1 %v469_v53  ;;  %v458_v63 = vld [vmem:[#allocation4 + $0x138] sm:$0xff]  ;;  %v444_v1 = vld [vmem:[#allocation4 + $0xc8] sm:$0xff]  ;;  %v457_v2 = vld [vmem:[#allocation4 + $0x130] sm:$0xff] }
 0x116   : > { %493 = vmatprep.subr.mxu0 %v460_v47  ;;  %562 = vmatprep.subr.mxu1 %v466_v55  ;;  %v443_v3 = vld [vmem:[#allocation4 + $0xc0] sm:$0xff]  ;;  %v454_v4 = vld [vmem:[#allocation4 + $0x118] sm:$0xff]  ;;  %v440_v5 = vld [vmem:[#allocation4 + $0xa8] sm:$0xff] }
 0x117   : > { %494 = vmatpush1.msra.mxu0 %v459_v49  ;;  %563 = vmatpush1.msra.mxu1 %v465_v57  ;;  %v453_v6 = vld [vmem:[#allocation4 + $0x110] sm:$0xff]  ;;  %v439_v7 = vld [vmem:[#allocation4 + $0xa0] sm:$0xff]  ;;  %v450_v8 = vld [vmem:[#allocation4 + $0xf8] sm:$0xff] }
 0x118   : > { %495 = vmatprep.subr.mxu0 %v456_v52  ;;  %564 = vmatprep.subr.mxu1 %v462_v59  ;;  %v436_v9 = vld [vmem:[#allocation4 + $0x88] sm:$0xff]  ;;  %v449_v10 = vld [vmem:[#allocation4 + $0xf0] sm:$0xff]  ;;  %v435_v11 = vld [vmem:[#allocation4 + $0x80] sm:$0xff] }
 0x119   : > { %496 = vmatpush1.msra.mxu0 %v455_v54  ;;  %565 = vmatpush1.msra.mxu1 %v461_v61  ;;  %v446_v12 = vld [vmem:[#allocation4 + $0xd8] sm:$0xff]  ;;  %v432_v13 = vld [vmem:[#allocation4 + $0x68] sm:$0xff]  ;;  %v445_v17 = vld [vmem:[#allocation4 + $0xd0] sm:$0xff] }
 0x11a   : > { %497 = vmatprep.subr.mxu0 %v452_v56  ;;  %566 = vmatprep.subr.mxu1 %v458_v63  ;;  %v431_v24 = vld [vmem:[#allocation4 + $0x60] sm:$0xff]  ;;  %v442_v25 = vld [vmem:[#allocation4 + $0xb8] sm:$0xff]  ;;  %v428_v26 = vld [vmem:[#allocation4 + $0x48] sm:$0xff] }
 0x11b   : > { %498 = vmatpush1.msra.mxu0 %v451_v58  ;;  %567 = vmatpush1.msra.mxu1 %v457_v2  ;;  %v441_v27 = vld [vmem:[#allocation4 + $0xb0] sm:$0xff]  ;;  %v427_v28 = vld [vmem:[#allocation4 + $0x40] sm:$0xff]  ;;  %v438_v29 = vld [vmem:[#allocation4 + $0x98] sm:$0xff] }
 0x11c   : > { %499 = vmatprep.subr.mxu0 %v448_v60  ;;  %568 = vmatprep.subr.mxu1 %v454_v4  ;;  %v424_v30 = vld [vmem:[#allocation4 + $0x28] sm:$0xff]  ;;  %v437_v31 = vld [vmem:[#allocation4 + $0x90] sm:$0xff]  ;;  %v423_v32 = vld [vmem:[#allocation4 + $0x20] sm:$0xff] }
 0x11d   : > { %500 = vmatpush1.msra.mxu0 %v447_v62  ;;  %569 = vmatpush1.msra.mxu1 %v453_v6  ;;  %v434_v33 = vld [vmem:[#allocation4 + $0x78] sm:$0xff]  ;;  %v420_v20 = vld [vmem:[#allocation4 + $0x8] sm:$0xff]  ;;  %v433_v21 = vld [vmem:[#allocation4 + $0x70] sm:$0xff] }
 0x11e   : > { %501 = vmatprep.subr.mxu0 %v444_v1  ;;  %570 = vmatprep.subr.mxu1 %v450_v8  ;;  %v419_v22 = vld [vmem:[#allocation4] sm:$0xff]  ;;  %v430_v23 = vld [vmem:[#allocation4 + $0x58] sm:$0xff]  ;;  %v429_v36 = vld [vmem:[#allocation4 + $0x50] sm:$0xff] }
 0x11f   : > { %502 = vmatpush1.msra.mxu0 %v443_v3  ;;  %571 = vmatpush1.msra.mxu1 %v449_v10  ;;  %v426_v37 = vld [vmem:[#allocation4 + $0x38] sm:$0xff]  ;;  %v425_v38 = vld [vmem:[#allocation4 + $0x30] sm:$0xff]  ;;  %v415_v41 = vld [vmem:[%s414_s24] sm:$0xff] }
 0x120   : > { %503 = vmatprep.subr.mxu0 %v440_v5  ;;  %572 = vmatprep.subr.mxu1 %v446_v12  ;;  %v422_v39 = vld [vmem:[#allocation4 + $0x18] sm:$0xff]  ;;  %v421_v40 = vld [vmem:[#allocation4 + $0x10] sm:$0xff]  ;;  %v416_v43 = vld [vmem:[%s414_s24 + $0x8] sm:$0xff] }
 0x121   : > { %504 = vmatpush1.msra.mxu0 %v439_v7  ;;  %573 = vmatpush1.msra.mxu1 %v445_v17  ;;  %v418_v50 = vld [vmem:[%s414_s24 + $0x18] sm:$0xff]  ;;  %v417_v52 = vld [vmem:[%s414_s24 + $0x10] sm:$0xff]  ;;  %v724_v5 = vld [vmem:[#allocation6 + $0x1e8] sm:$0xff] (%p403_p1) }
 0x122   : > { %505 = vmatprep.subr.mxu0 %v436_v9  ;;  %574 = vmatprep.subr.mxu1 %v442_v25  ;;  %v726_v6 = vld [vmem:[#allocation6 + $0x1f8] sm:$0xff] (%p403_p1)  ;;  %v723_v7 = vld [vmem:[#allocation6 + $0x1e0] sm:$0xff] (%p403_p1)  ;;  %v725_v8 = vld [vmem:[#allocation6 + $0x1f0] sm:$0xff] (%p403_p1) }
 0x123   : > { %506 = vmatpush1.msra.mxu0 %v435_v11  ;;  %575 = vmatpush1.msra.mxu1 %v441_v27  ;;  %v720_v9 = vld [vmem:[#allocation6 + $0x1c8] sm:$0xff] (%p403_p1)  ;;  %v722_v10 = vld [vmem:[#allocation6 + $0x1d8] sm:$0xff] (%p403_p1)  ;;  %v719_v11 = vld [vmem:[#allocation6 + $0x1c0] sm:$0xff] (%p403_p1) }
 0x124   : > { %507 = vmatprep.subr.mxu0 %v432_v13  ;;  %576 = vmatprep.subr.mxu1 %v438_v29  ;;  %v721_v12 = vld [vmem:[#allocation6 + $0x1d0] sm:$0xff] (%p403_p1)  ;;  %v716_v13 = vld [vmem:[#allocation6 + $0x1a8] sm:$0xff] (%p403_p1)  ;;  %v718_v17 = vld [vmem:[#allocation6 + $0x1b8] sm:$0xff] (%p403_p1) }
 0x125   : > { %508 = vmatpush1.msra.mxu0 %v431_v24  ;;  %577 = vmatpush1.msra.mxu1 %v437_v31  ;;  %v717_v24 = vld [vmem:[#allocation6 + $0x1b0] sm:$0xff] (%p403_p1)  ;;  %v712_v25 = vld [vmem:[#allocation6 + $0x188] sm:$0xff] (%p403_p1)  ;;  %v711_v27 = vld [vmem:[#allocation6 + $0x180] sm:$0xff] (%p403_p1) }
 0x126   : > { %509 = vmatprep.subr.mxu0 %v428_v26  ;;  %578 = vmatprep.subr.mxu1 %v434_v33  ;;  %v714_v26 = vld [vmem:[#allocation6 + $0x198] sm:$0xff] (%p403_p1)  ;;  %v708_v29 = vld [vmem:[#allocation6 + $0x168] sm:$0xff] (%p403_p1)  ;;  %v707_v31 = vld [vmem:[#allocation6 + $0x160] sm:$0xff] (%p403_p1) }
 0x127   : > { %510 = vmatpush1.msra.mxu0 %v427_v28  ;;  %579 = vmatpush1.msra.mxu1 %v433_v21  ;;  %v713_v28 = vld [vmem:[#allocation6 + $0x190] sm:$0xff] (%p403_p1)  ;;  %v704_v33 = vld [vmem:[#allocation6 + $0x148] sm:$0xff] (%p403_p1)  ;;  %v703_v21 = vld [vmem:[#allocation6 + $0x140] sm:$0xff] (%p403_p1) }
 0x128   : > { %511 = vmatprep.subr.mxu0 %v424_v30  ;;  %580 = vmatprep.subr.mxu1 %v430_v23  ;;  %v710_v30 = vld [vmem:[#allocation6 + $0x178] sm:$0xff] (%p403_p1)  ;;  %v700_v23 = vld [vmem:[#allocation6 + $0x128] sm:$0xff] (%p403_p1) }
 0x129   : > { %512 = vmatpush1.msra.mxu0 %v423_v32  ;;  %581 = vmatpush1.msra.mxu1 %v429_v36  ;;  %v709_v32 = vld [vmem:[#allocation6 + $0x170] sm:$0xff] (%p403_p1)  ;;  %v702_v36 = vld [vmem:[#allocation6 + $0x138] sm:$0xff] (%p403_p1) }
 0x12a   : > { %513 = vmatprep.subr.mxu0 %v420_v20  ;;  %582 = vmatprep.subr.mxu1 %v426_v37  ;;  %v706_v20 = vld [vmem:[#allocation6 + $0x158] sm:$0xff] (%p403_p1)  ;;  %v699_v37 = vld [vmem:[#allocation6 + $0x120] sm:$0xff] (%p403_p1) }
 0x12b   : > { %514 = vmatpush1.msra.mxu0 %v419_v22  ;;  %583 = vmatpush1.msra.mxu1 %v425_v38  ;;  %v705_v22 = vld [vmem:[#allocation6 + $0x150] sm:$0xff] (%p403_p1) }
 0x12c   : > { %548 = vmatmul.mubr.f32.vlgmr.msra.gmra.mxu0 %v1665_v35  ;;  %584 = vmatprep.subr.mxu1 %v422_v39  ;;  %v701_v38 = vld [vmem:[#allocation6 + $0x130] sm:$0xff] (%p403_p1)  ;;  %v696_v39 = vld [vmem:[#allocation6 + $0x108] sm:$0xff] (%p403_p1) }
 0x12d   : > { %585 = vmatpush1.msra.mxu1 %v421_v40  ;;  %813 = vmatprep.mubr.f32.mxu0 (%p403_p1), %v1688_v0  ;;  %v698_v40 = vld [vmem:[#allocation6 + $0x118] sm:$0xff] (%p403_p1) }
 0x12e   : > { %619 = vmatmul.mubr.f32.vlgmr.msra.gmra.mxu1 %v1665_v35  ;;  %749 = vmatprep.subr.mxu0 (%p403_p1), %v724_v5  ;;  %v667_v5 = vld [vmem:[#allocation6 + $0x20] sm:$0xff] (%p403_p1) }
 0x12f   :  { %926 = vmatprep.mubr.f32.mxu1 (%p403_p1), %v1688_v0  ;;  %862 = vmatprep.subr.mxu1 (%p403_p1), %v726_v6  ;;  %v669_v6 = vld [vmem:[#allocation6 + $0x30] sm:$0xff] (%p403_p1) }
 0x130   :  { %750 = vmatpush1.msra.mxu0 (%p403_p1), %v723_v7  ;;  %863 = vmatpush1.msra.mxu1 (%p403_p1), %v725_v8  ;;  %v664_v7 = vld [vmem:[#allocation6 + $0x8] sm:$0xff] (%p403_p1)  ;;  %v666_v8 = vld [vmem:[#allocation6 + $0x18] sm:$0xff] (%p403_p1) }
 0x131   :  { %751 = vmatprep.subr.mxu0 (%p403_p1), %v720_v9  ;;  %864 = vmatprep.subr.mxu1 (%p403_p1), %v722_v10  ;;  %v663_v9 = vld [vmem:[#allocation6] sm:$0xff] (%p403_p1)  ;;  %v665_v10 = vld [vmem:[#allocation6 + $0x10] sm:$0xff] (%p403_p1) }
 0x132   :  { %752 = vmatpush1.msra.mxu0 (%p403_p1), %v719_v11  ;;  %865 = vmatpush1.msra.mxu1 (%p403_p1), %v721_v12 }
 0x133   :  { %753 = vmatprep.subr.mxu0 (%p403_p1), %v716_v13  ;;  %866 = vmatprep.subr.mxu1 (%p403_p1), %v718_v17 }
 0x134   :  { %867 = vmatpush1.msra.mxu1 (%p403_p1), %v717_v24 }
 0x135   :  { %868 = vmatprep.subr.mxu1 (%p403_p1), %v714_v26 }
 0x136   :  { %869 = vmatpush1.msra.mxu1 (%p403_p1), %v713_v28 }
 0x137   :  { %870 = vmatprep.subr.mxu1 (%p403_p1), %v710_v30 }
 0x138   :  { %871 = vmatpush1.msra.mxu1 (%p403_p1), %v709_v32 }
 0x139   :  { %872 = vmatprep.subr.mxu1 (%p403_p1), %v706_v20 }
 0x13a   :  { %873 = vmatpush1.msra.mxu1 (%p403_p1), %v705_v22 }
 0x13b   :  { %874 = vmatprep.subr.mxu1 (%p403_p1), %v702_v36 }
 0x13c   :  { %875 = vmatpush1.msra.mxu1 (%p403_p1), %v701_v38 }
 0x13d   :  { %876 = vmatprep.subr.mxu1 (%p403_p1), %v698_v40 }
 0x1ec   : > { %v549_v42 = vpop.f32.mrf.mxu0 }
 0x1ed   : > { %v625_v44 = vadd.f32 %v549_v42, %v415_v41  ;;  %v695_v41 = vld [vmem:[#allocation6 + $0x100] sm:$0xff] (%p403_p1)  ;;  %v697_v42 = vld [vmem:[#allocation6 + $0x110] sm:$0xff] (%p403_p1) }
 0x1ee   : > { %v551_v45 = vpop.f32.mrf.mxu0  ;;  %v620_v49 = vpop.f32.mrf.mxu1  ;;  %877 = vmatpush1.msra.mxu1 (%p403_p1), %v697_v42 }
 0x1ef   : > { %v1416_v46 = vmul.f32 -1.442695, %v625_v44  ;;  %v626_v47 = vadd.f32 %v551_v45, %v416_v43  ;;  %v627_v53 = vadd.f32 %v620_v49, %v417_v52  ;;  %v692_v43 = vld [vmem:[#allocation6 + $0xe8] sm:$0xff] (%p403_p1)  ;;  %v694_v44 = vld [vmem:[#allocation6 + $0xf8] sm:$0xff] (%p403_p1)  ;;  %v691_v45 = vld [vmem:[#allocation6 + $0xe0] sm:$0xff] (%p403_p1) }
 0x1f0   : > { %v622_v51 = vpop.f32.mrf.mxu1  ;;  %878 = vmatprep.subr.mxu1 (%p403_p1), %v694_v44  ;;  %v687_v49 = vld [vmem:[#allocation6 + $0xc0] sm:$0xff] (%p403_p1)  ;;  %v686_v52 = vld [vmem:[#allocation6 + $0xb8] sm:$0xff] (%p403_p1) }
 0x1f1   : > { %1539 = vpow2.f32 %v1416_v46  ;;  %v1417_v48 = vmul.f32 -1.442695, %v626_v47  ;;  %v628_v35 = vadd.f32 %v622_v51, %v418_v50  ;;  %v693_v46 = vld [vmem:[#allocation6 + $0xf0] sm:$0xff] (%p403_p1)  ;;  %v688_v47 = vld [vmem:[#allocation6 + $0xc8] sm:$0xff] (%p403_p1) }
 0x1f2   :  { %v689_v50 = vld [vmem:[#allocation6 + $0xd0] sm:$0xff] (%p403_p1)  ;;  %879 = vmatpush1.msra.mxu1 (%p403_p1), %v693_v46  ;;  %v684_v51 = vld [vmem:[#allocation6 + $0xa8] sm:$0xff] (%p403_p1) }
 0x1f3   : > { %1541 = vpow2.f32 %v1417_v48  ;;  %v1418_v54 = vmul.f32 -1.442695, %v628_v35  ;;  %v690_v48 = vld [vmem:[#allocation6 + $0xd8] sm:$0xff] (%p403_p1) }
 0x1f4   : > { %1543 = vtanh.f32 %v627_v53  ;;  %880 = vmatprep.subr.mxu1 (%p403_p1), %v690_v48  ;;  %v685_v53 = vld [vmem:[#allocation6 + $0xb0] sm:$0xff] (%p403_p1) }
 0x1f5   : > { %1545 = vpow2.f32 %v1418_v54  ;;  %881 = vmatpush1.msra.mxu1 (%p403_p1), %v689_v50  ;;  %v680_v54 = vld [vmem:[#allocation6 + $0x88] sm:$0xff] (%p403_p1) }
 0x1f6   :  { %882 = vmatprep.subr.mxu1 (%p403_p1), %v686_v52 }
 0x1f7   :  { %883 = vmatpush1.msra.mxu1 (%p403_p1), %v685_v53 }
 0x1fe   : > { %v1540_v55 = vpop.eup %1539 }
 0x1ff   : > { %v632_v56 = vadd.f32 1.0, %v1540_v55  ;;  %v682_v55 = vld [vmem:[#allocation6 + $0x98] sm:$0xff] (%p403_p1) }
 0x200   : > { %v1542_v57 = vpop.eup %1541  ;;  %884 = vmatprep.subr.mxu1 (%p403_p1), %v682_v55 }
 0x201   : > { %1547 = vrcp.f32 %v632_v56  ;;  %v638_v58 = vadd.f32 1.0, %v1542_v57  ;;  %v1544_v59 = vpop.eup %1543  ;;  %v679_v56 = vld [vmem:[#allocation6 + $0x80] sm:$0xff] (%p403_p1)  ;;  %v681_v57 = vld [vmem:[#allocation6 + $0x90] sm:$0xff] (%p403_p1) }
 0x202   : > { %v1546_v60 = vpop.eup %1545  ;;  %885 = vmatpush1.msra.mxu1 (%p403_p1), %v681_v57 }
 0x203   : > { %1549 = vrcp.f32 %v638_v58  ;;  %v645_v63 = vadd.f32 1.0, %v1546_v60  ;;  %v676_v58 = vld [vmem:[#allocation6 + $0x68] sm:$0xff] (%p403_p1)  ;;  %v675_v60 = vld [vmem:[#allocation6 + $0x60] sm:$0xff] (%p403_p1) }
 0x205   : > { %1551 = vrcp.f32 %v645_v63  ;;  %v674_v63 = vld [vmem:[#allocation6 + $0x58] sm:$0xff] (%p403_p1) }
 0x20e   : > { %v1548_v61 = vpop.eup %1547 }
 0x20f   : > { %v649_v2 = vmul.f32 %v1548_v61, %v1544_v59  ;;  %v678_v59 = vld [vmem:[#allocation6 + $0x78] sm:$0xff] (%p403_p1)  ;;  %v677_v61 = vld [vmem:[#allocation6 + $0x70] sm:$0xff] (%p403_p1) }
 0x210   : > { %v1550_v62 = vpop.eup %1549  ;;  %886 = vmatprep.subr.mxu1 (%p403_p1), %v678_v59 }
 0x211   : > { %v648_v1 = vmul.f32 %v1661_v34, %v1550_v62  ;;  %v672_v62 = vld [vmem:[#allocation6 + $0x48] sm:$0xff] (%p403_p1)  ;;  %887 = vmatpush1.msra.mxu1 (%p403_p1), %v677_v61 }
 0x212   : > { %v1552_v3 = vpop.eup %1551  ;;  %888 = vmatprep.subr.mxu1 (%p403_p1), %v674_v63 }
 0x213   : > { %v650_v34 = vadd.f32 %v649_v2, %v648_v1   ;;  %v671_v1 = vld [vmem:[#allocation6 + $0x40] sm:$0xff] (%p403_p1)  ;;  %v673_v2 = vld [vmem:[#allocation6 + $0x50] sm:$0xff] (%p403_p1) }
 0x214   :  { %889 = vmatpush1.msra.mxu1 (%p403_p1), %v673_v2 }
 0x215   : > { %1553 = vtanh.f32 %v650_v34  ;;  %v715_v34 = vld [vmem:[#allocation6 + $0x1a0] sm:$0xff] (%p403_p1) }
 0x216   :  { %754 = vmatpush1.msra.mxu0 (%p403_p1), %v715_v34 }
 0x217   :  { %755 = vmatprep.subr.mxu0 (%p403_p1), %v712_v25 }
 0x218   :  { %756 = vmatpush1.msra.mxu0 (%p403_p1), %v711_v27  ;;  %v727_v27 = vld [vmem:[%s2074_s6] sm:$0xf] (%p403_p1)  ;;  %s1971_s6 = smov (%p403_p1), 0  }
 0x219   :  { %757 = vmatprep.subr.mxu0 (%p403_p1), %v708_v29  ;;  %v1921_v28 = vrot.slane (%p403_p1), %v727_v27, %v87_v15  ;;  %v1925_v29 = vrot.slane (%p403_p1), %v727_v27, %v95_v16  ;;  %v1929_v30 = vrot.slane (%p403_p1), %v727_v27, %v91_v18 }
 0x21a   :  { %758 = vmatpush1.msra.mxu0 (%p403_p1), %v707_v31  ;;  %v1933_v31 = vrot.slane (%p403_p1), %v727_v27, %v99_v19 }
 0x21b   :  { %759 = vmatprep.subr.mxu0 (%p403_p1), %v704_v33 }
 0x21c   :  { %760 = vmatpush1.msra.mxu0 (%p403_p1), %v703_v21 }
 0x21d   :  { %761 = vmatprep.subr.mxu0 (%p403_p1), %v700_v23 }
 0x21e   :  { %762 = vmatpush1.msra.mxu0 (%p403_p1), %v699_v37 }
 0x21f   :  { %763 = vmatprep.subr.mxu0 (%p403_p1), %v696_v39 }
 0x220   :  { %764 = vmatpush1.msra.mxu0 (%p403_p1), %v695_v41 }
 0x221   :  { %405 = sbr.rel (!%p403_p1) target bundleno = 267 (0x10b), region = 86  ;;  %765 = vmatprep.subr.mxu0 (%p403_p1), %v692_v43 }
 0x222   : > { %v1554_v4 = vpop.eup %1553  ;;  %766 = vmatpush1.msra.mxu0 (%p403_p1), %v691_v45 }
 0x223   : > { %v652_v35 = vmul.f32 %v1554_v4, %v1552_v3   ;;  %767 = vmatprep.subr.mxu0 (%p403_p1), %v688_v47  ;;  %v668_v3 = vld [vmem:[#allocation6 + $0x28] sm:$0xff] (%p403_p1)  ;;  %v670_v4 = vld [vmem:[#allocation6 + $0x38] sm:$0xff] (%p403_p1) }
 0x224   :  { %768 = vmatpush1.msra.mxu0 (%p403_p1), %v687_v49  ;;  %890 = vmatprep.subr.mxu1 (%p403_p1), %v670_v4 }
 0x225   : > { %654 = vst [vmem:[%s653_s2] sm:$0xff] %v652_v35  ;;  %v683_v35 = vld [vmem:[#allocation6 + $0xa0] sm:$0xff] (%p403_p1)  ;;  %769 = vmatprep.subr.mxu0 (%p403_p1), %v684_v51  ;;  %891 = vmatpush1.msra.mxu1 (%p403_p1), %v669_v6 }
 0x226   :  { %770 = vmatpush1.msra.mxu0 %v683_v35  ;;  %892 = vmatprep.subr.mxu1 %v666_v8 }
 0x227   :  { %771 = vmatprep.subr.mxu0 %v680_v54  ;;  %893 = vmatpush1.msra.mxu1 %v665_v10 }
 0x228   :  { %772 = vmatpush1.msra.mxu0 %v679_v56 }
 0x229   :  { %773 = vmatprep.subr.mxu0 %v676_v58 }
 0x22a   :  { %774 = vmatpush1.msra.mxu0 %v675_v60 }
 0x22b   :  { %775 = vmatprep.subr.mxu0 %v672_v62 }
 0x22c   :  { %776 = vmatpush1.msra.mxu0 %v671_v1  ;;  %v655_v11 = vld [vmem:[#allocation3] sm:$0xff]  ;;  %v656_v12 = vld [vmem:[#allocation3 + $0x8] sm:$0xff]  ;;  %v657_v13 = vld [vmem:[#allocation3 + $0x10] sm:$0xff] }
 0x22d   :  { %777 = vmatprep.subr.mxu0 %v668_v3  ;;  %927 = vmatmul.mubr.f32.vlgmr.msra.gmra.mxu1 %v655_v11  ;;  %v658_v17 = vld [vmem:[#allocation3 + $0x18] sm:$0xff]  ;;  %v659_v34 = vld [vmem:[#allocation3 + $0x20] sm:$0xff]  ;;  %v660_v24 = vld [vmem:[#allocation3 + $0x28] sm:$0xff] }
 0x22e   :  { %778 = vmatpush1.msra.mxu0 %v667_v5  ;;  %932 = vmatprep.mubr.f32.mxu1 %v1688_v0  ;;  %v661_v25 = vld [vmem:[#allocation3 + $0x30] sm:$0xff]  ;;  %v662_v26 = vld [vmem:[#allocation3 + $0x38] sm:$0xff] }
 0x22f   :  { %779 = vmatprep.subr.mxu0 %v664_v7 }
 0x230   :  { %780 = vmatpush1.msra.mxu0 %v663_v9 }
 0x231   :  { %814 = vmatmul.mubr.f32.vlgmr.msra.gmra.mxu0 %v655_v11  ;;  %933 = vmatmul.mubr.f32.gmra.mxu1 %v656_v12 }
 0x232   :  { %819 = vmatprep.mubr.f32.mxu0 %v1688_v0  ;;  %938 = vmatprep.mubr.f32.mxu1 %v1688_v0 }
 0x235   :  { %820 = vmatmul.mubr.f32.gmra.mxu0 %v656_v12  ;;  %939 = vmatmul.mubr.f32.gmra.mxu1 %v657_v13 }
 0x236   :  { %825 = vmatprep.mubr.f32.mxu0 %v1688_v0  ;;  %944 = vmatprep.mubr.f32.mxu1 %v1688_v0 }
 0x239   :  { %826 = vmatmul.mubr.f32.gmra.mxu0 %v657_v13  ;;  %945 = vmatmul.mubr.f32.gmra.mxu1 %v658_v17 }
 0x23a   :  { %831 = vmatprep.mubr.f32.mxu0 %v1688_v0  ;;  %950 = vmatprep.mubr.f32.mxu1 %v1688_v0 }
 0x23d   :  { %832 = vmatmul.mubr.f32.gmra.mxu0 %v658_v17  ;;  %951 = vmatmul.mubr.f32.gmra.mxu1 %v659_v34 }
 0x23e   :  { %837 = vmatprep.mubr.f32.mxu0 %v1688_v0  ;;  %956 = vmatprep.mubr.f32.mxu1 %v1688_v0 }
 0x241   :  { %838 = vmatmul.mubr.f32.gmra.mxu0 %v659_v34  ;;  %957 = vmatmul.mubr.f32.gmra.mxu1 %v660_v24 }
 0x242   :  { %843 = vmatprep.mubr.f32.mxu0 %v1688_v0  ;;  %962 = vmatprep.mubr.f32.mxu1 %v1688_v0 }
 0x245   :  { %844 = vmatmul.mubr.f32.gmra.mxu0 %v660_v24  ;;  %963 = vmatmul.mubr.f32.gmra.mxu1 %v661_v25 }
 0x246   :  { %849 = vmatprep.mubr.f32.mxu0 %v1688_v0  ;;  %968 = vmatprep.mubr.f32.mxu1 %v1688_v0 }
 0x249   :  { %850 = vmatmul.mubr.f32.gmra.mxu0 %v661_v25  ;;  %969 = vmatmul.mubr.f32.gmra.mxu1 %v662_v26 }
 0x24a   :  { %855 = vmatprep.mubr.f32.mxu0 %v1688_v0 }
 0x24d   :  { %856 = vmatmul.mubr.f32.gmra.mxu0 %v662_v26 }
 0x2ed   :  { %v928_v33 = vpop.f32.mrf.mxu1 }
 0x2ee   :  { %v929_v21 = vadd.f32 %v928_v33, %v1925_v29 }
 0x2ef   :  { %v930_v22 = vpop.f32.mrf.mxu1 }
 0x2f0   :  { %977 = vst [vmem:[#allocation2 + $0x10] sm:$0xff] %v929_v21  ;;  %v931_v23 = vadd.f32 %v930_v22, %v1933_v31  ;;  %v1967_v22 = vmov 0.0  }
 0x2f1   :  { %v815_v32 = vpop.f32.mrf.mxu0  ;;  %v934_v36 = vpop.f32.mrf.mxu1 }
 0x2f2   :  { %v816_v20 = vadd.f32 %v815_v32, %v1921_v28  ;;  %978 = vst [vmem:[#allocation2 + $0x18] sm:$0xff] %v931_v23  ;;  %v935_v19 = vadd.f32 %v934_v36, %v1925_v29 }
 0x2f3   :  { %v817_v15 = vpop.f32.mrf.mxu0  ;;  %v936_v38 = vpop.f32.mrf.mxu1 }
 0x2f4   :  { %975 = vst [vmem:[#allocation2] sm:$0xff] %v816_v20  ;;  %v818_v16 = vadd.f32 %v817_v15, %v1929_v30  ;;  %981 = vst [vmem:[#allocation2 + $0x30] sm:$0xff] %v935_v19  ;;  %v937_v40 = vadd.f32 %v936_v38, %v1933_v31 }
 0x2f5   :  { %v821_v18 = vpop.f32.mrf.mxu0  ;;  %v940_v42 = vpop.f32.mrf.mxu1 }
 0x2f6   :  { %976 = vst [vmem:[#allocation2 + $0x8] sm:$0xff] %v818_v16  ;;  %v822_v14 = vadd.f32 %v821_v18, %v1921_v28  ;;  %982 = vst [vmem:[#allocation2 + $0x38] sm:$0xff] %v937_v40  ;;  %v941_v44 = vadd.f32 %v940_v42, %v1925_v29  ;;  %v1969_v16 = vmov 0.0  }
 0x2f7   :  { %v823_v37 = vpop.f32.mrf.mxu0  ;;  %v942_v46 = vpop.f32.mrf.mxu1 }
 0x2f8   :  { %979 = vst [vmem:[#allocation2 + $0x20] sm:$0xff] %v822_v14  ;;  %v824_v39 = vadd.f32 %v823_v37, %v1929_v30  ;;  %985 = vst [vmem:[#allocation2 + $0x50] sm:$0xff] %v941_v44  ;;  %v943_v48 = vadd.f32 %v942_v46, %v1933_v31 }
 0x2f9   :  { %v827_v41 = vpop.f32.mrf.mxu0  ;;  %v946_v50 = vpop.f32.mrf.mxu1 }
 0x2fa   :  { %980 = vst [vmem:[#allocation2 + $0x28] sm:$0xff] %v824_v39  ;;  %v828_v43 = vadd.f32 %v827_v41, %v1921_v28  ;;  %986 = vst [vmem:[#allocation2 + $0x58] sm:$0xff] %v943_v48  ;;  %v947_v52 = vadd.f32 %v946_v50, %v1925_v29 }
 0x2fb   :  { %v829_v45 = vpop.f32.mrf.mxu0  ;;  %v948_v53 = vpop.f32.mrf.mxu1 }
 0x2fc   :  { %983 = vst [vmem:[#allocation2 + $0x40] sm:$0xff] %v828_v43  ;;  %v830_v47 = vadd.f32 %v829_v45, %v1929_v30  ;;  %989 = vst [vmem:[#allocation2 + $0x70] sm:$0xff] %v947_v52  ;;  %v949_v55 = vadd.f32 %v948_v53, %v1933_v31 }
 0x2fd   :  { %v833_v49 = vpop.f32.mrf.mxu0  ;;  %v952_v57 = vpop.f32.mrf.mxu1 }
 0x2fe   :  { %984 = vst [vmem:[#allocation2 + $0x48] sm:$0xff] %v830_v47  ;;  %v834_v51 = vadd.f32 %v833_v49, %v1921_v28  ;;  %990 = vst [vmem:[#allocation2 + $0x78] sm:$0xff] %v949_v55  ;;  %v953_v59 = vadd.f32 %v952_v57, %v1925_v29 }
 0x2ff   :  { %v835_v35 = vpop.f32.mrf.mxu0  ;;  %v954_v61 = vpop.f32.mrf.mxu1 }
 0x300   :  { %987 = vst [vmem:[#allocation2 + $0x60] sm:$0xff] %v834_v51  ;;  %v836_v54 = vadd.f32 %v835_v35, %v1929_v30  ;;  %993 = vst [vmem:[#allocation2 + $0x90] sm:$0xff] %v953_v59  ;;  %v955_v63 = vadd.f32 %v954_v61, %v1933_v31 }
 0x301   :  { %v839_v56 = vpop.f32.mrf.mxu0  ;;  %v958_v2 = vpop.f32.mrf.mxu1 }
 0x302   :  { %988 = vst [vmem:[#allocation2 + $0x68] sm:$0xff] %v836_v54  ;;  %v840_v58 = vadd.f32 %v839_v56, %v1921_v28  ;;  %994 = vst [vmem:[#allocation2 + $0x98] sm:$0xff] %v955_v63  ;;  %v959_v4 = vadd.f32 %v958_v2, %v1925_v29 }
 0x303   :  { %v841_v60 = vpop.f32.mrf.mxu0  ;;  %v960_v6 = vpop.f32.mrf.mxu1 }
 0x304   :  { %991 = vst [vmem:[#allocation2 + $0x80] sm:$0xff] %v840_v58  ;;  %v842_v62 = vadd.f32 %v841_v60, %v1929_v30  ;;  %997 = vst [vmem:[#allocation2 + $0xb0] sm:$0xff] %v959_v4  ;;  %v961_v8 = vadd.f32 %v960_v6, %v1933_v31 }
 0x305   :  { %v845_v1 = vpop.f32.mrf.mxu0  ;;  %v964_v10 = vpop.f32.mrf.mxu1 }
 0x306   :  { %992 = vst [vmem:[#allocation2 + $0x88] sm:$0xff] %v842_v62  ;;  %v846_v3 = vadd.f32 %v845_v1, %v1921_v28  ;;  %998 = vst [vmem:[#allocation2 + $0xb8] sm:$0xff] %v961_v8  ;;  %v965_v12 = vadd.f32 %v964_v10, %v1925_v29 }
 0x307   :  { %v847_v5 = vpop.f32.mrf.mxu0  ;;  %v966_v17 = vpop.f32.mrf.mxu1 }
 0x308   :  { %995 = vst [vmem:[#allocation2 + $0xa0] sm:$0xff] %v846_v3  ;;  %v848_v7 = vadd.f32 %v847_v5, %v1929_v30  ;;  %1001 = vst [vmem:[#allocation2 + $0xd0] sm:$0xff] %v965_v12  ;;  %v967_v24 = vadd.f32 %v966_v17, %v1933_v31 }
 0x309   :  { %v851_v9 = vpop.f32.mrf.mxu0  ;;  %v970_v26 = vpop.f32.mrf.mxu1 }
 0x30a   :  { %996 = vst [vmem:[#allocation2 + $0xa8] sm:$0xff] %v848_v7  ;;  %v852_v11 = vadd.f32 %v851_v9, %v1921_v28  ;;  %1002 = vst [vmem:[#allocation2 + $0xd8] sm:$0xff] %v967_v24  ;;  %v971_v32 = vadd.f32 %v970_v26, %v1925_v29 }
 0x30b   :  { %v853_v13 = vpop.f32.mrf.mxu0  ;;  %v972_v20 = vpop.f32.mrf.mxu1 }
 0x30c   :  { %999 = vst [vmem:[#allocation2 + $0xc0] sm:$0xff] %v852_v11  ;;  %v854_v34 = vadd.f32 %v853_v13, %v1929_v30  ;;  %1005 = vst [vmem:[#allocation2 + $0xf0] sm:$0xff] %v971_v32  ;;  %v973_v15 = vadd.f32 %v972_v20, %v1933_v31 }
 0x30d   :  { %v857_v25 = vpop.f32.mrf.mxu0 }
 0x30e   :  { %1000 = vst [vmem:[#allocation2 + $0xc8] sm:$0xff] %v854_v34  ;;  %v858_v27 = vadd.f32 %v857_v25, %v1921_v28  ;;  %1006 = vst [vmem:[#allocation2 + $0xf8] sm:$0xff] %v973_v15 }
 0x30f   :  { %v859_v33 = vpop.f32.mrf.mxu0 }
 0x310   :  { %1003 = vst [vmem:[#allocation2 + $0xe0] sm:$0xff] %v858_v27  ;;  %v860_v21 = vadd.f32 %v859_v33, %v1929_v30 }
 0x312   :  { %1004 = vst [vmem:[#allocation2 + $0xe8] sm:$0xff] %v860_v21 }
 0x313 LB: > { %v1086_v28 = vld [vmem:[#allocation8 + $0x1e8] sm:$0xff]  ;;  %v1085_v29 = vld [vmem:[#allocation8 + $0x1e0] sm:$0xff]  ;;  %v1690_v23 = vmov 0.0   ;;  %v1088_v37 = vld [vmem:[#allocation8 + $0x1f8] sm:$0xff]  ;;  %s1419_s27 = sshll.u32 %s1681_s6, 3  ;;  %s1012_s6 = sadd.s32 1, %s1681_s6   ;;  %s1681_s6 = sphi %s1971_s6, %s1012_s6   ;;  %v1677_v16 = vphi %v1969_v16, %v1258_v16   ;;  %v1673_v22 = vphi %v1967_v22, %v1256_v22  }
 0x314   : > { %v1082_v30 = vld [vmem:[#allocation8 + $0x1c8] sm:$0xff]  ;;  %1089 = vmatprep.subr.mxu0 %v1086_v28  ;;  %v1081_v31 = vld [vmem:[#allocation8 + $0x1c0] sm:$0xff]  ;;  %1153 = vmatprep.mubr.f32.mxu0 %v1690_v23  ;;  %v1087_v39 = vld [vmem:[#allocation8 + $0x1f0] sm:$0xff]  ;;  %s1016_s5 = sshra.s32 %s1419_s27, 3  ;;  %s1259_s29 = scalar_lea.vmem [#allocation3], %s1419_s27 }
 0x315   : > { %1090 = vmatpush1.msra.mxu0 %v1085_v29  ;;  %v1078_v18 = vld [vmem:[#allocation8 + $0x1a8] sm:$0xff]  ;;  %1224 = vmatprep.mubr.f32.mxu1 %v1690_v23  ;;  %v1077_v36 = vld [vmem:[#allocation8 + $0x1a0] sm:$0xff]  ;;  %v1084_v41 = vld [vmem:[#allocation8 + $0x1d8] sm:$0xff]  ;;  %s1427_s28 = sshll.u32 %s1016_s5, 5  ;;  %p1009_p2 = scmp.ge.s32.totalorder %s1012_s6, 8  }
 0x316   : > { %1091 = vmatprep.subr.mxu0 %v1082_v30  ;;  %v1074_v14 = vld [vmem:[#allocation8 + $0x188] sm:$0xff]  ;;  %v1073_v19 = vld [vmem:[#allocation8 + $0x180] sm:$0xff]  ;;  %1160 = vmatprep.subr.mxu1 %v1088_v37  ;;  %v1083_v42 = vld [vmem:[#allocation8 + $0x1d0] sm:$0xff]  ;;  %s1020_s1 = scalar_lea.vmem [#allocation2], %s1427_s28  ;;  %vm1691_vm2 = vmmov (%p1009_p2), 0   ;;  %vm1355_vm3 = vcmask (%p1009_p2), 97280  }
 0x317   : > { %1092 = vmatpush1.msra.mxu0 %v1081_v31  ;;  %v1070_v38 = vld [vmem:[#allocation8 + $0x168] sm:$0xff]  ;;  %v1069_v40 = vld [vmem:[#allocation8 + $0x160] sm:$0xff]  ;;  %1161 = vmatpush1.msra.mxu1 %v1087_v39  ;;  %v1080_v44 = vld [vmem:[#allocation8 + $0x1b8] sm:$0xff] }
 0x318   : > { %1093 = vmatprep.subr.mxu0 %v1078_v18  ;;  %v1066_v43 = vld [vmem:[#allocation8 + $0x148] sm:$0xff]  ;;  %1162 = vmatprep.subr.mxu1 %v1084_v41  ;;  %v1065_v45 = vld [vmem:[#allocation8 + $0x140] sm:$0xff]  ;;  %v1079_v46 = vld [vmem:[#allocation8 + $0x1b0] sm:$0xff] }
 0x319   : > { %1094 = vmatpush1.msra.mxu0 %v1077_v36  ;;  %1163 = vmatpush1.msra.mxu1 %v1083_v42  ;;  %v1076_v47 = vld [vmem:[#allocation8 + $0x198] sm:$0xff]  ;;  %v1062_v48 = vld [vmem:[#allocation8 + $0x128] sm:$0xff]  ;;  %v1075_v49 = vld [vmem:[#allocation8 + $0x190] sm:$0xff] }
 0x31a   : > { %1095 = vmatprep.subr.mxu0 %v1074_v14  ;;  %1164 = vmatprep.subr.mxu1 %v1080_v44  ;;  %v1061_v50 = vld [vmem:[#allocation8 + $0x120] sm:$0xff]  ;;  %v1072_v51 = vld [vmem:[#allocation8 + $0x178] sm:$0xff]  ;;  %v1058_v52 = vld [vmem:[#allocation8 + $0x108] sm:$0xff] }
 0x31b   : > { %1096 = vmatpush1.msra.mxu0 %v1073_v19  ;;  %1165 = vmatpush1.msra.mxu1 %v1079_v46  ;;  %v1071_v35 = vld [vmem:[#allocation8 + $0x170] sm:$0xff]  ;;  %v1057_v53 = vld [vmem:[#allocation8 + $0x100] sm:$0xff]  ;;  %v1068_v54 = vld [vmem:[#allocation8 + $0x158] sm:$0xff] }
 0x31c   : > { %1097 = vmatprep.subr.mxu0 %v1070_v38  ;;  %1166 = vmatprep.subr.mxu1 %v1076_v47  ;;  %v1054_v55 = vld [vmem:[#allocation8 + $0xe8] sm:$0xff]  ;;  %v1067_v56 = vld [vmem:[#allocation8 + $0x150] sm:$0xff]  ;;  %v1053_v57 = vld [vmem:[#allocation8 + $0xe0] sm:$0xff] }
 0x31d   : > { %1098 = vmatpush1.msra.mxu0 %v1069_v40  ;;  %1167 = vmatpush1.msra.mxu1 %v1075_v49  ;;  %v1064_v58 = vld [vmem:[#allocation8 + $0x138] sm:$0xff]  ;;  %v1050_v59 = vld [vmem:[#allocation8 + $0xc8] sm:$0xff]  ;;  %v1063_v60 = vld [vmem:[#allocation8 + $0x130] sm:$0xff] }
 0x31e   : > { %1099 = vmatprep.subr.mxu0 %v1066_v43  ;;  %1168 = vmatprep.subr.mxu1 %v1072_v51  ;;  %v1049_v61 = vld [vmem:[#allocation8 + $0xc0] sm:$0xff]  ;;  %v1060_v62 = vld [vmem:[#allocation8 + $0x118] sm:$0xff]  ;;  %v1046_v63 = vld [vmem:[#allocation8 + $0xa8] sm:$0xff] }
 0x31f   : > { %1100 = vmatpush1.msra.mxu0 %v1065_v45  ;;  %1169 = vmatpush1.msra.mxu1 %v1071_v35  ;;  %v1059_v1 = vld [vmem:[#allocation8 + $0x110] sm:$0xff]  ;;  %v1045_v2 = vld [vmem:[#allocation8 + $0xa0] sm:$0xff]  ;;  %v1056_v3 = vld [vmem:[#allocation8 + $0xf8] sm:$0xff] }
 0x320   : > { %1101 = vmatprep.subr.mxu0 %v1062_v48  ;;  %1170 = vmatprep.subr.mxu1 %v1068_v54  ;;  %v1042_v4 = vld [vmem:[#allocation8 + $0x88] sm:$0xff]  ;;  %v1055_v5 = vld [vmem:[#allocation8 + $0xf0] sm:$0xff]  ;;  %v1041_v6 = vld [vmem:[#allocation8 + $0x80] sm:$0xff] }
 0x321   : > { %1102 = vmatpush1.msra.mxu0 %v1061_v50  ;;  %1171 = vmatpush1.msra.mxu1 %v1067_v56  ;;  %v1052_v7 = vld [vmem:[#allocation8 + $0xd8] sm:$0xff]  ;;  %v1038_v8 = vld [vmem:[#allocation8 + $0x68] sm:$0xff]  ;;  %v1051_v9 = vld [vmem:[#allocation8 + $0xd0] sm:$0xff] }
 0x322   : > { %1103 = vmatprep.subr.mxu0 %v1058_v52  ;;  %1172 = vmatprep.subr.mxu1 %v1064_v58  ;;  %v1037_v10 = vld [vmem:[#allocation8 + $0x60] sm:$0xff]  ;;  %v1048_v11 = vld [vmem:[#allocation8 + $0xb8] sm:$0xff]  ;;  %v1034_v12 = vld [vmem:[#allocation8 + $0x48] sm:$0xff] }
 0x323   : > { %1104 = vmatpush1.msra.mxu0 %v1057_v53  ;;  %1173 = vmatpush1.msra.mxu1 %v1063_v60  ;;  %v1047_v13 = vld [vmem:[#allocation8 + $0xb0] sm:$0xff]  ;;  %v1033_v17 = vld [vmem:[#allocation8 + $0x40] sm:$0xff]  ;;  %v1044_v34 = vld [vmem:[#allocation8 + $0x98] sm:$0xff] }
 0x324   : > { %1105 = vmatprep.subr.mxu0 %v1054_v55  ;;  %1174 = vmatprep.subr.mxu1 %v1060_v62  ;;  %v1030_v24 = vld [vmem:[#allocation8 + $0x28] sm:$0xff]  ;;  %v1043_v25 = vld [vmem:[#allocation8 + $0x90] sm:$0xff]  ;;  %v1029_v26 = vld [vmem:[#allocation8 + $0x20] sm:$0xff] }
 0x325   : > { %1106 = vmatpush1.msra.mxu0 %v1053_v57  ;;  %1175 = vmatpush1.msra.mxu1 %v1059_v1  ;;  %v1040_v27 = vld [vmem:[#allocation8 + $0x78] sm:$0xff]  ;;  %v1026_v32 = vld [vmem:[#allocation8 + $0x8] sm:$0xff]  ;;  %v1039_v33 = vld [vmem:[#allocation8 + $0x70] sm:$0xff] }
 0x326   : > { %1107 = vmatprep.subr.mxu0 %v1050_v59  ;;  %1176 = vmatprep.subr.mxu1 %v1056_v3  ;;  %v1025_v20 = vld [vmem:[#allocation8] sm:$0xff]  ;;  %v1036_v21 = vld [vmem:[#allocation8 + $0x58] sm:$0xff]  ;;  %v1035_v15 = vld [vmem:[#allocation8 + $0x50] sm:$0xff] }
 0x327   : > { %1108 = vmatpush1.msra.mxu0 %v1049_v61  ;;  %1177 = vmatpush1.msra.mxu1 %v1055_v5  ;;  %v1032_v28 = vld [vmem:[#allocation8 + $0x38] sm:$0xff]  ;;  %v1031_v29 = vld [vmem:[#allocation8 + $0x30] sm:$0xff]  ;;  %v1021_v23 = vld [vmem:[%s1020_s1] sm:$0xff] }
 0x328   : > { %1109 = vmatprep.subr.mxu0 %v1046_v63  ;;  %1178 = vmatprep.subr.mxu1 %v1052_v7  ;;  %v1028_v30 = vld [vmem:[#allocation8 + $0x18] sm:$0xff]  ;;  %v1027_v31 = vld [vmem:[#allocation8 + $0x10] sm:$0xff]  ;;  %v1022_v36 = vld [vmem:[%s1020_s1 + $0x8] sm:$0xff] }
 0x329   : > { %1110 = vmatpush1.msra.mxu0 %v1045_v2  ;;  %1179 = vmatpush1.msra.mxu1 %v1051_v9  ;;  %v1024_v41 = vld [vmem:[%s1020_s1 + $0x18] sm:$0xff]  ;;  %v1023_v43 = vld [vmem:[%s1020_s1 + $0x10] sm:$0xff]  ;;  %v1275_v60 = vld [vmem:[%s2075_s7 + $0x68] sm:$0xff] (%p1009_p2) }
 0x32a   : > { %1111 = vmatprep.subr.mxu0 %v1042_v4  ;;  %1180 = vmatprep.subr.mxu1 %v1048_v11  ;;  %v1277_v58 = vld [vmem:[%s2075_s7 + $0x78] sm:$0xff] (%p1009_p2)  ;;  %v1276_v59 = vld [vmem:[%s2075_s7 + $0x70] sm:$0xff] (%p1009_p2)  ;;  %v1271_v63 = vld [vmem:[%s2075_s7 + $0x48] sm:$0xff] (%p1009_p2) }
 0x32b   : > { %1112 = vmatpush1.msra.mxu0 %v1041_v6  ;;  %1181 = vmatpush1.msra.mxu1 %v1047_v13  ;;  %v1273_v61 = vld [vmem:[%s2075_s7 + $0x58] sm:$0xff] (%p1009_p2)  ;;  %v1272_v62 = vld [vmem:[%s2075_s7 + $0x50] sm:$0xff] (%p1009_p2)  ;;  %v1270_v1 = vld [vmem:[%s2075_s7 + $0x40] sm:$0xff] (%p1009_p2) }
 0x32c   : > { %1113 = vmatprep.subr.mxu0 %v1038_v8  ;;  %1182 = vmatprep.subr.mxu1 %v1044_v34  ;;  %v1269_v2 = vld [vmem:[%s2075_s7 + $0x38] sm:$0xff] (%p1009_p2)  ;;  %v1268_v3 = vld [vmem:[%s2075_s7 + $0x30] sm:$0xff] (%p1009_p2)  ;;  %v1267_v4 = vld [vmem:[%s2075_s7 + $0x28] sm:$0xff] (%p1009_p2) }
 0x32d   : > { %1114 = vmatpush1.msra.mxu0 %v1037_v10  ;;  %1183 = vmatpush1.msra.mxu1 %v1043_v25  ;;  %v1266_v5 = vld [vmem:[%s2075_s7 + $0x20] sm:$0xff] (%p1009_p2)  ;;  %v1265_v6 = vld [vmem:[%s2075_s7 + $0x18] sm:$0xff] (%p1009_p2)  ;;  %v1264_v7 = vld [vmem:[%s2075_s7 + $0x10] sm:$0xff] (%p1009_p2) }
 0x32e   : > { %1115 = vmatprep.subr.mxu0 %v1034_v12  ;;  %1184 = vmatprep.subr.mxu1 %v1040_v27  ;;  %v1263_v8 = vld [vmem:[%s2075_s7 + $0x8] sm:$0xff] (%p1009_p2)  ;;  %v1262_v9 = vld [vmem:[%s2075_s7] sm:$0xff] (%p1009_p2) }
 0x32f   : > { %1116 = vmatpush1.msra.mxu0 %v1033_v17  ;;  %1185 = vmatpush1.msra.mxu1 %v1039_v33  ;;  %v1425_v11 = vld [vmem:[%s2076_s8] ss:$0 sm:$0xff] (%p1009_p2) }
 0x330   : > { %1117 = vmatprep.subr.mxu0 %v1030_v24  ;;  %1186 = vmatprep.subr.mxu1 %v1036_v21 }
 0x331   : > { %1118 = vmatpush1.msra.mxu0 %v1029_v26  ;;  %1187 = vmatpush1.msra.mxu1 %v1035_v15 }
 0x332   : > { %1119 = vmatprep.subr.mxu0 %v1026_v32  ;;  %1188 = vmatprep.subr.mxu1 %v1032_v28 }
 0x333   : > { %1120 = vmatpush1.msra.mxu0 %v1025_v20  ;;  %1189 = vmatpush1.msra.mxu1 %v1031_v29 }
 0x334   : > { %1154 = vmatmul.mubr.f32.vlgmr.msra.gmra.mxu0 %v1677_v16  ;;  %1190 = vmatprep.subr.mxu1 %v1028_v30 }
 0x335   : > { %1191 = vmatpush1.msra.mxu1 %v1027_v31  ;;  %1445 = vmatprep.subr.mxu0 (%p1009_p2), %v1688_v0 }
 0x336   : > { %1225 = vmatmul.mubr.f32.vlgmr.msra.gmra.mxu1 %v1677_v16  ;;  %1446 = vmatpush3.msra.mxu0 (%p1009_p2), %v1277_v58 }
 0x337   :  { %1477 = vmatprep.mubr.msk.f32.mxu0 (%p1009_p2), %vm1691_vm2, %v1688_v0  ;;  %1447 = vmatprep.subr.mxu0 (%p1009_p2), %v1688_v0 }
 0x338   :  { %1448 = vmatpush3.msra.mxu0 (%p1009_p2), %v1276_v59 }
 0x339   :  { %1449 = vmatprep.subr.mxu0 (%p1009_p2), %v1688_v0 }
 0x33a   :  { %1450 = vmatpush3.msra.mxu0 (%p1009_p2), %v1275_v60 }
 0x33b   :  { %1451 = vmatprep.subr.mxu0 (%p1009_p2), %v1688_v0 }
 0x3f4   : > { %v1155_v18 = vpop.f32.mrf.mxu0 }
 0x3f5   : > { %v1231_v14 = vadd.f32 %v1155_v18, %v1021_v23 }
 0x3f6   : > { %v1157_v19 = vpop.f32.mrf.mxu0  ;;  %v1226_v40 = vpop.f32.mrf.mxu1 }
 0x3f7   : > { %v1422_v37 = vmul.f32 -1.442695, %v1231_v14  ;;  %v1232_v38 = vadd.f32 %v1157_v19, %v1022_v36  ;;  %v1233_v44 = vadd.f32 %v1226_v40, %v1023_v43 }
 0x3f8   : > { %v1228_v42 = vpop.f32.mrf.mxu1 }
 0x3f9   : > { %1555 = vpow2.f32 %v1422_v37  ;;  %v1423_v39 = vmul.f32 -1.442695, %v1232_v38  ;;  %v1234_v16 = vadd.f32 %v1228_v42, %v1024_v41 }
 0x3fb   : > { %1557 = vpow2.f32 %v1423_v39  ;;  %v1424_v45 = vmul.f32 -1.442695, %v1234_v16 }
 0x3fc   : > { %1559 = vtanh.f32 %v1233_v44 }
 0x3fd   : > { %1561 = vpow2.f32 %v1424_v45 }
 0x406   : > { %v1556_v46 = vpop.eup %1555 }
 0x407   : > { %v1238_v47 = vadd.f32 1.0, %v1556_v46 }
 0x408   : > { %v1558_v48 = vpop.eup %1557 }
 0x409   : > { %1563 = vrcp.f32 %v1238_v47  ;;  %v1244_v49 = vadd.f32 1.0, %v1558_v48  ;;  %v1560_v50 = vpop.eup %1559 }
 0x40a   : > { %v1562_v51 = vpop.eup %1561 }
 0x40b   : > { %1565 = vrcp.f32 %v1244_v49  ;;  %v1251_v53 = vadd.f32 1.0, %v1562_v51 }
 0x40d   : > { %1567 = vrcp.f32 %v1251_v53 }
 0x416   : > { %v1564_v52 = vpop.eup %1563 }
 0x417   : > { %v1255_v55 = vmul.f32 %v1564_v52, %v1560_v50 }
 0x418   : > { %v1566_v35 = vpop.eup %1565 }
 0x419   : > { %v1254_v54 = vmul.f32 %v1673_v22, %v1566_v35 }
 0x41a   : > { %v1568_v56 = vpop.eup %1567 }
 0x41b   : > { %v1256_v22 = vadd.f32 %v1255_v55, %v1254_v54  }
 0x41d   : > { %1569 = vtanh.f32 %v1256_v22  ;;  %v1274_v22 = vld [vmem:[%s2075_s7 + $0x60] sm:$0xff] (%p1009_p2) }
 0x41e   :  { %1452 = vmatpush3.msra.mxu0 (%p1009_p2), %v1274_v22 }
 0x41f   :  { %1453 = vmatprep.subr.mxu0 (%p1009_p2), %v1688_v0 }
 0x420   :  { %1454 = vmatpush3.msra.mxu0 (%p1009_p2), %v1273_v61 }
 0x421   :  { %1455 = vmatprep.subr.mxu0 (%p1009_p2), %v1688_v0 }
 0x422   :  { %1456 = vmatpush3.msra.mxu0 (%p1009_p2), %v1272_v62 }
 0x423   :  { %1457 = vmatprep.subr.mxu0 (%p1009_p2), %v1688_v0 }
 0x424   :  { %1458 = vmatpush3.msra.mxu0 (%p1009_p2), %v1271_v63 }
 0x425   :  { %1459 = vmatprep.subr.mxu0 (%p1009_p2), %v1688_v0 }
 0x426   :  { %1460 = vmatpush3.msra.mxu0 (%p1009_p2), %v1270_v1 }
 0x427   :  { %1461 = vmatprep.subr.mxu0 (%p1009_p2), %v1688_v0 }
 0x428   :  { %1462 = vmatpush3.msra.mxu0 (%p1009_p2), %v1269_v2 }
 0x429   :  { %1011 = sbr.rel (!%p1009_p2) target bundleno = 787 (0x313), region = 97  ;;  %1463 = vmatprep.subr.mxu0 (%p1009_p2), %v1688_v0 }
 0x42a   : > { %v1570_v57 = vpop.eup %1569  ;;  %1464 = vmatpush3.msra.mxu0 (%p1009_p2), %v1268_v3 }
 0x42b   : > { %v1258_v16 = vmul.f32 %v1570_v57, %v1568_v56   ;;  %1465 = vmatprep.subr.mxu0 (%p1009_p2), %v1688_v0 }
 0x42c   :  { %1466 = vmatpush3.msra.mxu0 (%p1009_p2), %v1267_v4 }
 0x42d   : > { %1260 = vst [vmem:[%s1259_s29] sm:$0xff] %v1258_v16  ;;  %1467 = vmatprep.subr.mxu0 (%p1009_p2), %v1688_v0 }
 0x42e   :  { %1468 = vmatpush3.msra.mxu0 %v1266_v5 }
 0x42f   :  { %1469 = vmatprep.subr.mxu0 %v1688_v0 }
 0x430   :  { %1470 = vmatpush3.msra.mxu0 %v1265_v6 }
 0x431   :  { %1471 = vmatprep.subr.mxu0 %v1688_v0 }
 0x432   :  { %1472 = vmatpush3.msra.mxu0 %v1264_v7 }
 0x433   :  { %1473 = vmatprep.subr.mxu0 %v1688_v0 }
 0x434   :  { %1474 = vmatpush3.msra.mxu0 %v1263_v8  ;;  %v1261_v10 = vld [vmem:[#allocation3 + $0x38] sm:$0xff] }
 0x435   :  { %1475 = vmatprep.subr.mxu0 %v1688_v0 }
 0x436   :  { %1476 = vmatpush3.msra.mxu0 %v1262_v9 }
 0x437   :  { %1478 = vmatmul.mubr.f32.vlgmr.msra.gmra.mxu0 %v1261_v10 }
 0x4f7   :  { %v1351_v12 = vpop.f32.mrf.mxu0 }
 0x4f8   :  { %v1352_v13 = vadd.f32 %v1425_v11, %v1351_v12 }
 0x4f9   :  { %v1479_v17 = vpop.f32.mrf.mxu0 }
 0x4fa   :  { %1356 = vst.msk [vmem:[%s2077_s9] sm:$0xff] %vm1355_vm3, %v1352_v13 }
 0x4fb   :  { %1361 = vsyncpa [#allocation5], 1 }
 0x4fc   :  { %1362 = vsyncpa [#allocation7], 1 }

</bundles_post_ra>
